<compile_context>
chip_gen: v7x
topology: tpu7x:2x2x1
jax: 0.10.0
libtpu: 0.0.40
codegen_flags: <defaults>
</compile_context>

<pallas_src>
import math
from functools import partial

import numpy as np

import jax
import jax.numpy as jnp
from jax.experimental import pallas as pl
from jax.experimental.pallas import tpu as pltpu


# ------------------------------- Pallas kernel --------------------------------
def _disc_resblock_kernel(x_ref, w1_ref, b1_ref, w2_ref, b2_ref,
                          wres_ref, bres_ref, shift_ref, ph_ref, pw_ref,
                          out_ref, *, K):
    """Everything is lane-dense and every op is a matmul / VPU elementwise:
         x_ref     : (H, N*Cin*W)            input, lane order (n, ci, w)
         w1_ref    : (K, N*Cin*W, N*Cout*W)  per-kh band matrices (kw taps, W zero-pad
                                             and per-image block-diagonal folded in)
         w2_ref    : (K, N*Cout*W, N*Cout*W)
         wres_ref  : (N*Cin*W, N*Cout*W)     1x1 residual conv as a block matrix
         b*_ref    : (1, N*Cout*W)           biases repeated over (n, w)
         shift_ref : (K, H, H)               eye(H, k=kh-PAD): per-tap H shift + H
                                             zero-padding as a tiny left matmul
         ph_ref    : (Hs, H)                 H-direction pool (left matmul)
         pw_ref    : (N*Cout*W, N*Cout*Ws)   W-direction pool + 1/DS^2 (right matmul)
         out_ref   : (Hs, N*Cout*Ws)         (8, 128) slab -> single unmasked store
    """
    PAD = K // 2
    f32 = jnp.float32
    x = x_ref[...]                                            # (H, N*Cin*W)

    def conv_same(z, w_ref, b_ref):
        # KxK "same" conv.  Per tap kh: shift rows by (kh - PAD) with zero boundary
        # (constant shift matrix, MXU is idle -> effectively free), then one band
        # matmul whose contraction axis is the full (n, ci, w) lane axis.
        y = None
        for kh in range(K):
            lhs = z if kh == PAD else jnp.dot(shift_ref[kh], z,
                                              preferred_element_type=f32)
            t = jnp.dot(lhs, w_ref[kh], preferred_element_type=f32)
            y = t if y is None else y + t
        return y + b_ref[...]

    # ---- main path ----
    xa = jnp.maximum(x, 0.0)                                  # initial ReLU
    y1 = jnp.maximum(conv_same(xa, w1_ref, b1_ref), 0.0)      # conv1 + ReLU
    # Dropout(p=0) is the identity.
    # TODO(synk): nonzero dropout_ratio would need pltpu.prng_seed + stateful_bernoulli.
    y2 = conv_same(y1, w2_ref, b2_ref)                        # conv2

    # ---- residual path: 1x1 conv (gain sqrt(2)) on the ORIGINAL (un-activated) input ----
    res = jnp.dot(x, wres_ref[...], preferred_element_type=f32) + bres_ref[...]

    # ---- fused residual add + AvgPool2d(DS): out = P_H @ (y2 + res) @ P_W ----
    z = y2 + res                                              # (H, N*Cout*W)
    zh = jnp.dot(ph_ref[...], z, preferred_element_type=f32)  # (Hs, N*Cout*W)
    out_ref[...] = jnp.dot(zh, pw_ref[...],
                           preferred_element_type=f32).astype(out_ref.dtype)


# ------------------------- wrapper-side weight folding -------------------------
def _band_weights(w_oihw, W):
    """Fold kw taps + W-direction zero padding into per-kh band matrices B with
       B[kh, ci*W + w_src, co*W + w] = w[co, ci, kh, w_src - w + PAD] (0 outside band)."""
    Cout, Cin, K, _ = w_oihw.shape
    PAD = K // 2
    idx = np.arange(W)
    kw = idx[:, None] - idx[None, :] + PAD            # kw[w_src, w] = w_src - w + PAD
    valid = (kw >= 0) & (kw < K)
    kw = np.clip(kw, 0, K - 1)
    t = w_oihw[:, :, :, kw]                           # (Cout, Cin, K, W_src, W)
    t = t * jnp.asarray(valid, dtype=w_oihw.dtype)
    t = jnp.transpose(t, (2, 1, 3, 0, 4))             # (K, Cin, W_src, Cout, W)
    return t.reshape(K, Cin * W, Cout * W)


def _res_weights(wres_oihw, W):
    """1x1 conv: B[ci*W + w_src, co*W + w] = wres[co, ci] * [w_src == w]."""
    Cout, Cin = wres_oihw.shape[:2]
    wm = wres_oihw[:, :, 0, 0]                        # (Cout, Cin)
    eye = jnp.eye(W, dtype=wm.dtype)
    t = wm.T[:, None, :, None] * eye[None, :, None, :]  # (Cin, W_src, Cout, W)
    return t.reshape(Cin * W, Cout * W)


def _block_diag_n(B, N):
    """Replicate B (..., I, J) block-diagonally over the batch: (..., N*I, N*J)."""
    *lead, I, J = B.shape
    eye = jnp.eye(N, dtype=B.dtype)
    T = eye[:, None, :, None] * B[..., None, :, None, :]    # (..., N, I, N, J)
    return T.reshape(*lead, N * I, N * J)


def _pool_matrix(C, W, DS):
    """W-direction average pool + 1/DS^2 scale, block-diagonal over C: (C*W, C*Ws)."""
    Ws = W // DS
    poolw = np.zeros((W, Ws), np.float32)
    poolw[np.arange(W), np.arange(W) // DS] = 1.0 / (DS * DS)
    return jnp.asarray(np.kron(np.eye(C, dtype=np.float32), poolw))


def fold_params(w1_oihw, b1, w2_oihw, b2, wres_oihw, bres, *, N, H, W, downsample_size):
    """One-time (per parameter update) folding of module params into kernel operands.
    Hoisted out of the per-step forward so no gather/transpose XLA ops surround the kernel."""
    Cout, Cin, K, K2 = w1_oihw.shape
    assert K == K2 and K % 2 == 1, "only odd 'same' kernels are supported"
    DS = downsample_size
    assert H % DS == 0 and W % DS == 0, "H, W must be divisible by downsample_size"
    PAD = K // 2
    f32 = jnp.float32

    wb1 = _block_diag_n(_band_weights(w1_oihw.astype(f32), W), N)   # (K, N*Cin*W,  N*Cout*W)
    wb2 = _block_diag_n(_band_weights(w2_oihw.astype(f32), W), N)   # (K, N*Cout*W, N*Cout*W)
    wbr = _block_diag_n(_res_weights(wres_oihw.astype(f32), W), N)  # (N*Cin*W, N*Cout*W)

    b1r = jnp.tile(jnp.repeat(b1.astype(f32), W), N).reshape(1, N * Cout * W)
    b2r = jnp.tile(jnp.repeat(b2.astype(f32), W), N).reshape(1, N * Cout * W)
    brr = jnp.tile(jnp.repeat(bres.astype(f32), W), N).reshape(1, N * Cout * W)

    shifts = jnp.asarray(
        np.stack([np.eye(H, k=kh - PAD, dtype=np.float32) for kh in range(K)]))  # (K, H, H)

    Hs = H // DS
    ph = np.zeros((Hs, H), np.float32)
    ph[np.arange(H) // DS, np.arange(H)] = 1.0
    ph = jnp.asarray(ph)                                            # (Hs, H)
    pw = _pool_matrix(N * Cout, W, DS)                              # (N*Cout*W, N*Cout*Ws)

    return dict(wb1=wb1, b1r=b1r, wb2=wb2, b2r=b2r, wbr=wbr, brr=brr,
                shifts=shifts, ph=ph, pw=pw)


# ----------------------------------- forward -----------------------------------
def disc_resblock_forward(x_nchw, params):
    """x_nchw: (N, Cin, H, W) f32 -> (N, Cout, H/DS, W/DS) f32."""
    N, Cin, H, W = x_nchw.shape
    K = params["shifts"].shape[0]
    Cout = params["pw"].shape[0] // (N * W)
    Ws = params["pw"].shape[1] // (N * Cout)
    Hs = params["ph"].shape[0]

    # (N, Cin, H, W) -> (H, N*Cin*W): lane axis = (n, ci, w).
    # NOTE: when stacking blocks, keep this lane-dense layout between blocks and only
    # convert to/from NCHW at model boundaries (the relayout is pure HBM traffic).
    xr = jnp.transpose(x_nchw, (2, 0, 1, 3)).reshape(H, N * Cin * W).astype(jnp.float32)

    vmem = pl.BlockSpec(memory_space=pltpu.MemorySpace.VMEM)
    out2d = pl.pallas_call(
        partial(_disc_resblock_kernel, K=K),
        out_shape=jax.ShapeDtypeStruct((Hs, N * Cout * Ws), jnp.float32),
        in_specs=[vmem] * 10,
        out_specs=vmem,
    )(xr, params["wb1"], params["b1r"], params["wb2"], params["b2r"],
      params["wbr"], params["brr"], params["shifts"], params["ph"], params["pw"])

    # (Hs, N*Cout*Ws) -> (N, Cout, Hs, Ws)
    return jnp.transpose(out2d.reshape(Hs, N, Cout, Ws), (1, 2, 0, 3))


# --------------------------- parameter construction ----------------------------
def xavier_uniform(key, shape_oihw, gain=1.0):
    cout, cin, kh, kw = shape_oihw
    fan_in, fan_out = cin * kh * kw, cout * kh * kw
    a = gain * math.sqrt(6.0 / (fan_in + fan_out))
    return jax.random.uniform(key, shape_oihw, jnp.float32, -a, a)


def spectral_normalize(w_oihw, key, n_iters=1, eps=1e-12):
    # Mimics torch spectral_norm at first forward: one power iteration on the
    # (Cout, Cin*KH*KW) matrix with a deterministic random u (parameter preprocessing).
    cout = w_oihw.shape[0]
    wm = w_oihw.reshape(cout, -1)
    u = jax.random.normal(key, (cout,), jnp.float32)
    u = u / (jnp.linalg.norm(u) + eps)
    v = None
    for _ in range(n_iters):
        v = wm.T @ u
        v = v / (jnp.linalg.norm(v) + eps)
        u = wm @ v
        u = u / (jnp.linalg.norm(u) + eps)
    sigma = u @ (wm @ v)
    return w_oihw / sigma


# ----------------------------- pure-JAX reference -------------------------------
def _reference(x_nchw, w1_oihw, b1, w2_oihw, b2, wres_oihw, bres, ds):
    dn = ("NCHW", "OIHW", "NCHW")

    def conv(z, w, b, pad):
        out = jax.lax.conv_general_dilated(
            z, w, (1, 1), [(pad, pad), (pad, pad)],
            dimension_numbers=dn, precision=jax.lax.Precision.HIGHEST)
        return out + b[None, :, None, None]

    def pool(z):
        n, c, h, w = z.shape
        return z.reshape(n, c, h // ds, ds, w // ds, ds).mean(axis=(3, 5))

    a = jax.nn.relu(x_nchw)
    a = conv(a, w1_oihw, b1, 1)
    a = jax.nn.relu(a)
    a = conv(a, w2_oihw, b2, 1)
    a = pool(a)
    r = pool(conv(x_nchw, wres_oihw, bres, 0))
    return a + r


# ------------------------------------ main ---------------------------------------
if __name__ == "__main__":
    key = jax.random.PRNGKey(0)
    ks = jax.random.split(key, 9)

    N, Cin, H, W = 2, 4, 16, 16
    Cout, K, DS = 8, 3, 2

    x = jax.random.normal(ks[0], (N, Cin, H, W), jnp.float32)

    w1 = spectral_normalize(xavier_uniform(ks[1], (Cout, Cin, K, K)), ks[2])
    w2 = spectral_normalize(xavier_uniform(ks[3], (Cout, Cout, K, K)), ks[4])
    wres = xavier_uniform(ks[5], (Cout, Cin, 1, 1), gain=math.sqrt(2.0))

    b1 = 0.01 * jax.random.normal(ks[6], (Cout,), jnp.float32)
    b2 = 0.01 * jax.random.normal(ks[7], (Cout,), jnp.float32)
    bres = 0.01 * jax.random.normal(ks[8], (Cout,), jnp.float32)

    # Parameter folding done ONCE, outside the per-step forward.
    params = fold_params(w1, b1, w2, b2, wres, bres,
                         N=N, H=H, W=W, downsample_size=DS)

    fwd = jax.jit(disc_resblock_forward)
    out = jax.block_until_ready(fwd(x, params))

    ref = jax.block_until_ready(_reference(x, w1, b1, w2, b2, wres, bres, DS))
    assert out.shape == (N, Cout, H // DS, W // DS), out.shape
    if not jnp.allclose(out, ref, atol=1e-3, rtol=1e-3):
        err = float(jnp.max(jnp.abs(out - ref)))
        raise AssertionError(
            f"Pallas kernel output does not match JAX reference (max abs err {err})")

    print("KERNEL_OK")
</pallas_src>

<mosaic_0001>
module attributes {stable_mosaic.version = 11 : i64} {
  func.func @_disc_resblock_kernel(%arg0: memref<16x128xf32, #tpu.memory_space<vmem>>, %arg1: memref<3x128x256xf32, #tpu.memory_space<vmem>>, %arg2: memref<1x256xf32, #tpu.memory_space<vmem>>, %arg3: memref<3x256x256xf32, #tpu.memory_space<vmem>>, %arg4: memref<1x256xf32, #tpu.memory_space<vmem>>, %arg5: memref<128x256xf32, #tpu.memory_space<vmem>>, %arg6: memref<1x256xf32, #tpu.memory_space<vmem>>, %arg7: memref<3x16x16xf32, #tpu.memory_space<vmem>>, %arg8: memref<8x16xf32, #tpu.memory_space<vmem>>, %arg9: memref<256x128xf32, #tpu.memory_space<vmem>>, %arg10: memref<8x128xf32, #tpu.memory_space<vmem>>) attributes {dimension_semantics = [], scalar_prefetch = 0 : i64, scratch_operands = 0 : i64, tpu.core_type = #tpu.core_type<tc>} {
    %c0 = arith.constant 0 : index
    %c0_0 = arith.constant 0 : index
    %0 = vector.load %arg0[%c0, %c0_0] : memref<16x128xf32, #tpu.memory_space<vmem>>, vector<16x128xf32>
    %cst = arith.constant 0.000000e+00 : f32
    %1 = vector.broadcast %cst : f32 to vector<16x128xf32>
    %2 = arith.maximumf %0, %1 : vector<16x128xf32>
    %c0_1 = arith.constant 0 : index
    %c0_2 = arith.constant 0 : index
    %c0_3 = arith.constant 0 : index
    %3 = vector.load %arg7[%c0_1, %c0_2, %c0_3] : memref<3x16x16xf32, #tpu.memory_space<vmem>>, vector<1x16x16xf32>
    %4 = vector.shape_cast %3 : vector<1x16x16xf32> to vector<16x16xf32>
    %cst_4 = arith.constant dense<0.000000e+00> : vector<16x128xf32>
    %5 = tpu.matmul %4, %2, %cst_4 {dimension_numbers = #tpu.dot_dimension_numbers<[1], [0], [0], [1], [0, 0, 1, 1], [], []>} : vector<16x16xf32>, vector<16x128xf32>, vector<16x128xf32> -> vector<16x128xf32>
    %c0_5 = arith.constant 0 : index
    %c0_6 = arith.constant 0 : index
    %c0_7 = arith.constant 0 : index
    %6 = vector.load %arg1[%c0_5, %c0_6, %c0_7] : memref<3x128x256xf32, #tpu.memory_space<vmem>>, vector<1x128x256xf32>
    %7 = vector.shape_cast %6 : vector<1x128x256xf32> to vector<128x256xf32>
    %cst_8 = arith.constant dense<0.000000e+00> : vector<16x256xf32>
    %8 = tpu.matmul %5, %7, %cst_8 {dimension_numbers = #tpu.dot_dimension_numbers<[1], [0], [0], [1], [0, 0, 1, 1], [], []>} : vector<16x128xf32>, vector<128x256xf32>, vector<16x256xf32> -> vector<16x256xf32>
    %c1 = arith.constant 1 : index
    %c0_9 = arith.constant 0 : index
    %c0_10 = arith.constant 0 : index
    %9 = vector.load %arg1[%c1, %c0_9, %c0_10] : memref<3x128x256xf32, #tpu.memory_space<vmem>>, vector<1x128x256xf32>
    %10 = vector.shape_cast %9 : vector<1x128x256xf32> to vector<128x256xf32>
    %cst_11 = arith.constant dense<0.000000e+00> : vector<16x256xf32>
    %11 = tpu.matmul %2, %10, %cst_11 {dimension_numbers = #tpu.dot_dimension_numbers<[1], [0], [0], [1], [0, 0, 1, 1], [], []>} : vector<16x128xf32>, vector<128x256xf32>, vector<16x256xf32> -> vector<16x256xf32>
    %12 = arith.addf %8, %11 : vector<16x256xf32>
    %c2 = arith.constant 2 : index
    %c0_12 = arith.constant 0 : index
    %c0_13 = arith.constant 0 : index
    %13 = vector.load %arg7[%c2, %c0_12, %c0_13] : memref<3x16x16xf32, #tpu.memory_space<vmem>>, vector<1x16x16xf32>
    %14 = vector.shape_cast %13 : vector<1x16x16xf32> to vector<16x16xf32>
    %cst_14 = arith.constant dense<0.000000e+00> : vector<16x128xf32>
    %15 = tpu.matmul %14, %2, %cst_14 {dimension_numbers = #tpu.dot_dimension_numbers<[1], [0], [0], [1], [0, 0, 1, 1], [], []>} : vector<16x16xf32>, vector<16x128xf32>, vector<16x128xf32> -> vector<16x128xf32>
    %c2_15 = arith.constant 2 : index
    %c0_16 = arith.constant 0 : index
    %c0_17 = arith.constant 0 : index
    %16 = vector.load %arg1[%c2_15, %c0_16, %c0_17] : memref<3x128x256xf32, #tpu.memory_space<vmem>>, vector<1x128x256xf32>
    %17 = vector.shape_cast %16 : vector<1x128x256xf32> to vector<128x256xf32>
    %cst_18 = arith.constant dense<0.000000e+00> : vector<16x256xf32>
    %18 = tpu.matmul %15, %17, %cst_18 {dimension_numbers = #tpu.dot_dimension_numbers<[1], [0], [0], [1], [0, 0, 1, 1], [], []>} : vector<16x128xf32>, vector<128x256xf32>, vector<16x256xf32> -> vector<16x256xf32>
    %19 = arith.addf %12, %18 : vector<16x256xf32>
    %c0_19 = arith.constant 0 : index
    %c0_20 = arith.constant 0 : index
    %20 = vector.load %arg2[%c0_19, %c0_20] : memref<1x256xf32, #tpu.memory_space<vmem>>, vector<1x256xf32>
    %21 = vector.broadcast %20 : vector<1x256xf32> to vector<16x256xf32>
    %22 = arith.addf %19, %21 : vector<16x256xf32>
    %cst_21 = arith.constant 0.000000e+00 : f32
    %23 = vector.broadcast %cst_21 : f32 to vector<16x256xf32>
    %24 = arith.maximumf %22, %23 : vector<16x256xf32>
    %c0_22 = arith.constant 0 : index
    %c0_23 = arith.constant 0 : index
    %c0_24 = arith.constant 0 : index
    %25 = vector.load %arg7[%c0_22, %c0_23, %c0_24] : memref<3x16x16xf32, #tpu.memory_space<vmem>>, vector<1x16x16xf32>
    %26 = vector.shape_cast %25 : vector<1x16x16xf32> to vector<16x16xf32>
    %cst_25 = arith.constant dense<0.000000e+00> : vector<16x256xf32>
    %27 = tpu.matmul %26, %24, %cst_25 {dimension_numbers = #tpu.dot_dimension_numbers<[1], [0], [0], [1], [0, 0, 1, 1], [], []>} : vector<16x16xf32>, vector<16x256xf32>, vector<16x256xf32> -> vector<16x256xf32>
    %c0_26 = arith.constant 0 : index
    %c0_27 = arith.constant 0 : index
    %c0_28 = arith.constant 0 : index
    %28 = vector.load %arg3[%c0_26, %c0_27, %c0_28] : memref<3x256x256xf32, #tpu.memory_space<vmem>>, vector<1x256x256xf32>
    %29 = vector.shape_cast %28 : vector<1x256x256xf32> to vector<256x256xf32>
    %cst_29 = arith.constant dense<0.000000e+00> : vector<16x256xf32>
    %30 = tpu.matmul %27, %29, %cst_29 {dimension_numbers = #tpu.dot_dimension_numbers<[1], [0], [0], [1], [0, 0, 1, 1], [], []>} : vector<16x256xf32>, vector<256x256xf32>, vector<16x256xf32> -> vector<16x256xf32>
    %c1_30 = arith.constant 1 : index
    %c0_31 = arith.constant 0 : index
    %c0_32 = arith.constant 0 : index
    %31 = vector.load %arg3[%c1_30, %c0_31, %c0_32] : memref<3x256x256xf32, #tpu.memory_space<vmem>>, vector<1x256x256xf32>
    %32 = vector.shape_cast %31 : vector<1x256x256xf32> to vector<256x256xf32>
    %cst_33 = arith.constant dense<0.000000e+00> : vector<16x256xf32>
    %33 = tpu.matmul %24, %32, %cst_33 {dimension_numbers = #tpu.dot_dimension_numbers<[1], [0], [0], [1], [0, 0, 1, 1], [], []>} : vector<16x256xf32>, vector<256x256xf32>, vector<16x256xf32> -> vector<16x256xf32>
    %34 = arith.addf %30, %33 : vector<16x256xf32>
    %c2_34 = arith.constant 2 : index
    %c0_35 = arith.constant 0 : index
    %c0_36 = arith.constant 0 : index
    %35 = vector.load %arg7[%c2_34, %c0_35, %c0_36] : memref<3x16x16xf32, #tpu.memory_space<vmem>>, vector<1x16x16xf32>
    %36 = vector.shape_cast %35 : vector<1x16x16xf32> to vector<16x16xf32>
    %cst_37 = arith.constant dense<0.000000e+00> : vector<16x256xf32>
    %37 = tpu.matmul %36, %24, %cst_37 {dimension_numbers = #tpu.dot_dimension_numbers<[1], [0], [0], [1], [0, 0, 1, 1], [], []>} : vector<16x16xf32>, vector<16x256xf32>, vector<16x256xf32> -> vector<16x256xf32>
    %c2_38 = arith.constant 2 : index
    %c0_39 = arith.constant 0 : index
    %c0_40 = arith.constant 0 : index
    %38 = vector.load %arg3[%c2_38, %c0_39, %c0_40] : memref<3x256x256xf32, #tpu.memory_space<vmem>>, vector<1x256x256xf32>
    %39 = vector.shape_cast %38 : vector<1x256x256xf32> to vector<256x256xf32>
    %cst_41 = arith.constant dense<0.000000e+00> : vector<16x256xf32>
    %40 = tpu.matmul %37, %39, %cst_41 {dimension_numbers = #tpu.dot_dimension_numbers<[1], [0], [0], [1], [0, 0, 1, 1], [], []>} : vector<16x256xf32>, vector<256x256xf32>, vector<16x256xf32> -> vector<16x256xf32>
    %41 = arith.addf %34, %40 : vector<16x256xf32>
    %c0_42 = arith.constant 0 : index
    %c0_43 = arith.constant 0 : index
    %42 = vector.load %arg4[%c0_42, %c0_43] : memref<1x256xf32, #tpu.memory_space<vmem>>, vector<1x256xf32>
    %43 = vector.broadcast %42 : vector<1x256xf32> to vector<16x256xf32>
    %44 = arith.addf %41, %43 : vector<16x256xf32>
    %c0_44 = arith.constant 0 : index
    %c0_45 = arith.constant 0 : index
    %45 = vector.load %arg5[%c0_44, %c0_45] : memref<128x256xf32, #tpu.memory_space<vmem>>, vector<128x256xf32>
    %cst_46 = arith.constant dense<0.000000e+00> : vector<16x256xf32>
    %46 = tpu.matmul %0, %45, %cst_46 {dimension_numbers = #tpu.dot_dimension_numbers<[1], [0], [0], [1], [0, 0, 1, 1], [], []>} : vector<16x128xf32>, vector<128x256xf32>, vector<16x256xf32> -> vector<16x256xf32>
    %c0_47 = arith.constant 0 : index
    %c0_48 = arith.constant 0 : index
    %47 = vector.load %arg6[%c0_47, %c0_48] : memref<1x256xf32, #tpu.memory_space<vmem>>, vector<1x256xf32>
    %48 = vector.broadcast %47 : vector<1x256xf32> to vector<16x256xf32>
    %49 = arith.addf %46, %48 : vector<16x256xf32>
    %50 = arith.addf %44, %49 : vector<16x256xf32>
    %c0_49 = arith.constant 0 : index
    %c0_50 = arith.constant 0 : index
    %51 = vector.load %arg8[%c0_49, %c0_50] : memref<8x16xf32, #tpu.memory_space<vmem>>, vector<8x16xf32>
    %cst_51 = arith.constant dense<0.000000e+00> : vector<8x256xf32>
    %52 = tpu.matmul %51, %50, %cst_51 {dimension_numbers = #tpu.dot_dimension_numbers<[1], [0], [0], [1], [0, 0, 1, 1], [], []>} : vector<8x16xf32>, vector<16x256xf32>, vector<8x256xf32> -> vector<8x256xf32>
    %c0_52 = arith.constant 0 : index
    %c0_53 = arith.constant 0 : index
    %53 = vector.load %arg9[%c0_52, %c0_53] : memref<256x128xf32, #tpu.memory_space<vmem>>, vector<256x128xf32>
    %cst_54 = arith.constant dense<0.000000e+00> : vector<8x128xf32>
    %54 = tpu.matmul %52, %53, %cst_54 {dimension_numbers = #tpu.dot_dimension_numbers<[1], [0], [0], [1], [0, 0, 1, 1], [], []>} : vector<8x256xf32>, vector<256x128xf32>, vector<8x128xf32> -> vector<8x128xf32>
    %c0_55 = arith.constant 0 : index
    %c0_56 = arith.constant 0 : index
    %55 = vector.load %arg10[%c0_55, %c0_56] : memref<8x128xf32, #tpu.memory_space<vmem>>, vector<8x128xf32>
    tpu.vector_store %arg10[%c0_55, %c0_56], %54 {strides = array<i32>} : memref<8x128xf32, #tpu.memory_space<vmem>>, vector<8x128xf32>,
    return
  }
}

</mosaic_0001>

<bundles_post_ra>
// kernel: disc_resblock_forward.1
= control target key start
LH: loop header
LB: loop body
LE: loop exit
PB: predicated region body
PF: predicated region fallthrough
CT: control target
= control target key end

     0   :  { %15 = vsyncpa [#allocation3], 0  ;;  %s2383_s0 = inlined_call_operand.vmem [shape: f32[16,128], index: 0, kind: input, shape index: {}]   ;;  %s2384_s1 = inlined_call_operand.hbm [shape: f32[3,128,256], index: 1, kind: input, shape index: {}]   ;;  %s2385_s2 = inlined_call_operand.vmem [shape: f32[1,256], index: 2, kind: input, shape index: {}]   ;;  %s2386_s3 = inlined_call_operand.hbm [shape: f32[3,256,256], index: 3, kind: input, shape index: {}]   ;;  %s2387_s4 = inlined_call_operand.vmem [shape: f32[1,256], index: 4, kind: input, shape index: {}]   ;;  %s2388_s5 = inlined_call_operand.vmem [shape: f32[128,256], index: 5, kind: input, shape index: {}]   ;;  %s2389_s6 = inlined_call_operand.vmem [shape: f32[1,256], index: 6, kind: input, shape index: {}]   ;;  %s2390_s7 = inlined_call_operand.vmem [shape: f32[3,16,16], index: 7, kind: input, shape index: {}]   ;;  %s2391_s8 = inlined_call_operand.vmem [shape: f32[8,16], index: 8, kind: input, shape index: {}]   ;;  %s2392_s9 = inlined_call_operand.hbm [shape: f32[256,128], index: 9, kind: input, shape index: {}]   ;;  %s2393_s10 = inlined_call_operand.vmem [shape: f32[8,128], index: 10, kind: output, shape index: {}]  }
   0x1   :  { %16 = vsyncpa [#allocation5], 0  ;;  %s2059_s13 = smov [#allocation4]   ;;  %s2060_s15 = smov [#allocation2]  }
   0x2   :  { %s38_s14 = sshll.u32 %s2059_s13, 4  ;;  %s24_s16 = sshll.u32 %s2060_s15, 4  ;;  %s39_s14 = int_to_ptr.vmem [resolvable:$true] %s38_s14  ;;  %s2122_s16 = int_to_ptr.vmem [resolvable:$true] %s24_s16 }
   0x3   :  { %s1989_s19 = scalar_lea.hbm %s2386_s3, 24576 }
   0x4   :  { %p1990_p0 = scmp.ne.s32.totalorder %s2386_s3, %s1989_s19  ;;  %p1993_p1 = scmp.lt.u32.totalorder %s1989_s19, %s2386_s3 }
   0x6   :  { %p1995_p2 = pnand %p1993_p1, %p1990_p0 }
   0x8   :  { %1998 = shalt.err (!%p1995_p2)
}
   0x9   :  { %s1999_s24 = scalar_lea.vmem %s39_s14, 24576  ;;  %p2004_p4 = scmp.lt.s32.totalorder %s39_s14, %s39_s14 }
   0xa   :  { %p2000_p3 = scmp.ne.s32.totalorder %s39_s14, %s1999_s24  ;;  %p2005_p5 = scmp.lt.s32.totalorder %s1999_s24, %s1999_s24 }
   0xc   :  { %p2006_p6 = por %p2005_p5, %p2004_p4 }
   0xe   :  { %p2007_p7 = pnand %p2006_p6, %p2000_p3 }
  0x10   :  { %2010 = shalt.err (!%p2007_p7)
}
  0x11   :  { %s2061_s25 = smov 256   ;;  %s2062_s26 = smov 16  }
  0x12   :  { %44 = dma.hbm_to_vmem [thread:$0]  %s2386_s3, 24576, %s39_s14, [#allocation5], %s2061_s25, %s2061_s25, %s2062_s26  }
  0x13   :  { %s2011_s11 = scalar_lea.hbm %s2384_s1, 12288 }
  0x14   :  { %p2012_p8 = scmp.ne.s32.totalorder %s2384_s1, %s2011_s11  ;;  %p2015_p9 = scmp.lt.u32.totalorder %s2011_s11, %s2384_s1 }
  0x16   :  { %p2017_p10 = pnand %p2015_p9, %p2012_p8 }
  0x18   :  { %2020 = shalt.err (!%p2017_p10)
}
  0x19   :  { %s2021_s18 = scalar_lea.vmem %s2122_s16, 12288  ;;  %p2026_p12 = scmp.lt.s32.totalorder %s2122_s16, %s2122_s16 }
  0x1a   :  { %p2022_p11 = scmp.ne.s32.totalorder %s2122_s16, %s2021_s18  ;;  %p2027_p13 = scmp.lt.s32.totalorder %s2021_s18, %s2021_s18 }
  0x1c   :  { %p2028_p0 = por %p2027_p13, %p2026_p12 }
  0x1e   :  { %p2029_p1 = pnand %p2028_p0, %p2022_p11 }
  0x20   :  { %2032 = shalt.err (!%p2029_p1)
}
  0x21   :  { %30 = dma.hbm_to_vmem [thread:$0]  %s2384_s1, 12288, %s2122_s16, [#allocation3], %s2061_s25, %s2061_s25, %s2062_s26  }
  0x22   :  { %s2063_s19 = smov [#allocation6]   ;;  %s2033_s23 = scalar_lea.hbm %s2392_s9, 4096 }
  0x23   :  { %s60_s20 = sshll.u32 %s2063_s19, 4  ;;  %p2034_p2 = scmp.ne.s32.totalorder %s2392_s9, %s2033_s23  ;;  %s61_s20 = int_to_ptr.vmem [resolvable:$true] %s60_s20 }
  0x24   :  { %p2037_p3 = scmp.lt.u32.totalorder %s2033_s23, %s2392_s9 }
  0x26   :  { %p2039_p4 = pnand %p2037_p3, %p2034_p2 }
  0x28   :  { %2042 = shalt.err (!%p2039_p4)
}
  0x29   :  { %s2043_s30 = scalar_lea.vmem %s61_s20, 4096  ;;  %p2048_p6 = scmp.lt.s32.totalorder %s61_s20, %s61_s20 }
  0x2a   :  { %p2044_p5 = scmp.ne.s32.totalorder %s61_s20, %s2043_s30  ;;  %p2049_p7 = scmp.lt.s32.totalorder %s2043_s30, %s2043_s30 }
  0x2c   :  { %p2050_p8 = por %p2049_p7, %p2048_p6 }
  0x2e   :  { %p2051_p9 = pnand %p2050_p8, %p2044_p5 }
  0x30   :  { %2054 = shalt.err (!%p2051_p9)
}
  0x31   :  { %s2064_s1 = smov 128   ;;  %s2065_s16 = smov 8  }
  0x32   :  { %66 = dma.hbm_to_vmem [thread:$0]  %s2392_s9, 4096, %s61_s20, [#allocation5], %s2064_s1, %s2064_s1, %s2065_s16  }
  0x33   :  { %2055 = dma.done.wait [#allocation3], 12288  }
  0x34   :  { %2056 = vsyncadd [#allocation3], 4294955008 }
  0x35   :  { %2057 = dma.done.wait [#allocation5], 28672  }
  0x36   :  { %2058 = vsyncadd [#allocation5], 4294938624  ;;  %v2066_v0 = vmov 0.0   ;;  %vm82_vm0 = vcmask 130048   ;;  %v2169_v1 = vld [vmem:[%s2383_s0] sm:$0xff]  ;;  %v2174_v2 = vld [vmem:[%s2383_s0 + $0x8] sm:$0xff] }
  0x37   :  { %293 = vmatprep.mubr.f32.mxu1 %v2066_v0  ;;  %v2179_v3 = vld [vmem:[%s2390_s7] sm:$0xff]  ;;  %v78_v4 = vmax.f32 %v2169_v1, 0.0  ;;  %v79_v5 = vmax.f32 %v2174_v2, 0.0  ;;  %v198_v6 = vld [vmem:[#allocation2 + $0x108] sm:$0xff]  ;;  %v200_v7 = vld [vmem:[#allocation2 + $0x118] sm:$0xff] }
  0x38   :  { %1567 = vmatprep.mubr.msk.f32.mxu0 %vm82_vm0, %v2179_v3  ;;  %v197_v8 = vld [vmem:[#allocation2 + $0x100] sm:$0xff]  ;;  %v1581_v10 = vpack.c.bf16 %v200_v7, %v198_v6  ;;  %v199_v11 = vld [vmem:[#allocation2 + $0x110] sm:$0xff]  ;;  %v202_v12 = vld [vmem:[#allocation2 + $0x128] sm:$0xff] }
  0x39   :  { %v1577_v9 = vpack.c.bf16 %v79_v5, %v78_v4  ;;  %v204_v13 = vld [vmem:[#allocation2 + $0x138] sm:$0xff]  ;;  %v1583_v14 = vpack.c.bf16 %v199_v11, %v197_v8  ;;  %v201_v16 = vld [vmem:[#allocation2 + $0x120] sm:$0xff]  ;;  %v203_v17 = vld [vmem:[#allocation2 + $0x130] sm:$0xff] }
  0x3a   :  { %v1585_v15 = vpack.c.bf16 %v204_v13, %v202_v12  ;;  %1582 = vmatprep.subr.bf16.mxu1 %v1581_v10  ;;  %v206_v18 = vld [vmem:[#allocation2 + $0x148] sm:$0xff]  ;;  %v208_v19 = vld [vmem:[#allocation2 + $0x158] sm:$0xff]  ;;  %v1511_v21 = vld [vmem:[%s2390_s7 + $0x20] sm:$0xff]  ;;  %v1587_v22 = vpack.c.bf16 %v203_v17, %v201_v16 }
  0x3b   :  { %1578 = vmatprep.subr.bf16.mxu0 %v1577_v9  ;;  %v2192_v20 = vld [vmem:[%s2390_s7 + $0x8] sm:$0xff]  ;;  %1584 = vmatpush1.bf16.msra.mxu1 %v1583_v14  ;;  %v1589_v23 = vpack.c.bf16 %v208_v19, %v206_v18  ;;  %v205_v24 = vld [vmem:[#allocation2 + $0x140] sm:$0xff]  ;;  %v207_v25 = vld [vmem:[#allocation2 + $0x150] sm:$0xff] }
  0x3c   :  { %1580 = vmatpush3.bf16.msra.mxu0 %v1577_v9  ;;  %1586 = vmatprep.subr.bf16.mxu1 %v1585_v15  ;;  %v210_v26 = vld [vmem:[#allocation2 + $0x168] sm:$0xff]  ;;  %v212_v27 = vld [vmem:[#allocation2 + $0x178] sm:$0xff]  ;;  %v1591_v29 = vpack.c.bf16 %v207_v25, %v205_v24  ;;  %v209_v31 = vld [vmem:[#allocation2 + $0x160] sm:$0xff] }
  0x3d   :  { %1646 = vmatprep.subr.bf16.mxu0 %v1577_v9  ;;  %v1512_v28 = vld [vmem:[%s2390_s7 + $0x28] sm:$0xff]  ;;  %v1593_v30 = vpack.c.bf16 %v212_v27, %v210_v26  ;;  %v211_v32 = vld [vmem:[#allocation2 + $0x170] sm:$0xff]  ;;  %v216_v34 = vld [vmem:[#allocation2 + $0x198] sm:$0xff] }
  0x3e   :  { %v214_v33 = vld [vmem:[#allocation2 + $0x188] sm:$0xff]  ;;  %v1595_v35 = vpack.c.bf16 %v211_v32, %v209_v31  ;;  %v213_v37 = vld [vmem:[#allocation2 + $0x180] sm:$0xff]  ;;  %v215_v38 = vld [vmem:[#allocation2 + $0x190] sm:$0xff] }
  0x3f   :  { %1568 = vmatmul.mubr.msk.f32.vlgmr.msra.gmra.mrb[0].mxu0 %vm82_vm0, %v2192_v20  ;;  %1588 = vmatpush1.bf16.msra.mxu1 %v1587_v22  ;;  %v1597_v36 = vpack.c.bf16 %v216_v34, %v214_v33  ;;  %v218_v39 = vld [vmem:[#allocation2 + $0x1a8] sm:$0xff]  ;;  %v220_v40 = vld [vmem:[#allocation2 + $0x1b8] sm:$0xff]  ;;  %v1599_v41 = vpack.c.bf16 %v215_v38, %v213_v37  ;;  %v217_v43 = vld [vmem:[#allocation2 + $0x1a0] sm:$0xff] }
  0x40   :  { %1648 = vmatpush3.bf16.msra.mxu0 %v1577_v9  ;;  %1574 = vmatprep.mubr.msk.f32.mxu0 %vm82_vm0, %v1511_v21  ;;  %v1601_v42 = vpack.c.bf16 %v220_v40, %v218_v39  ;;  %v219_v44 = vld [vmem:[#allocation2 + $0x1b0] sm:$0xff]  ;;  %v222_v45 = vld [vmem:[#allocation2 + $0x1c8] sm:$0xff]  ;;  %v224_v46 = vld [vmem:[#allocation2 + $0x1d8] sm:$0xff] }
  0x41   :  { %1590 = vmatprep.subr.bf16.mxu1 %v1589_v23  ;;  %v1603_v47 = vpack.c.bf16 %v219_v44, %v217_v43  ;;  %v1605_v48 = vpack.c.bf16 %v224_v46, %v222_v45  ;;  %v221_v49 = vld [vmem:[#allocation2 + $0x1c0] sm:$0xff]  ;;  %v223_v50 = vld [vmem:[#allocation2 + $0x1d0] sm:$0xff]  ;;  %v226_v51 = vld [vmem:[#allocation2 + $0x1e8] sm:$0xff] }
  0x42   :  { %v228_v52 = vld [vmem:[#allocation2 + $0x1f8] sm:$0xff]  ;;  %v1607_v53 = vpack.c.bf16 %v223_v50, %v221_v49  ;;  %v225_v55 = vld [vmem:[#allocation2 + $0x1e0] sm:$0xff]  ;;  %v227_v56 = vld [vmem:[#allocation2 + $0x1f0] sm:$0xff] }
  0x43   :  { %1575 = vmatmul.mubr.msk.f32.vlgmr.msra.gmra.mrb[2].mxu0 %vm82_vm0, %v1512_v28  ;;  %1592 = vmatpush1.bf16.msra.mxu1 %v1591_v29  ;;  %v1609_v54 = vpack.c.bf16 %v228_v52, %v226_v51  ;;  %v165_v57 = vld [vmem:[#allocation2 + $0x8] sm:$0xff]  ;;  %v167_v58 = vld [vmem:[#allocation2 + $0x18] sm:$0xff]  ;;  %v1611_v59 = vpack.c.bf16 %v227_v56, %v225_v55  ;;  %v164_v61 = vld [vmem:[#allocation2] sm:$0xff] }
  0x44   :  { %665 = vmatprep.mubr.f32.mxu0 %v2066_v0  ;;  %1594 = vmatprep.subr.bf16.mxu1 %v1593_v30  ;;  %v1613_v60 = vpack.c.bf16 %v167_v58, %v165_v57  ;;  %v166_v62 = vld [vmem:[#allocation2 + $0x10] sm:$0xff]  ;;  %v169_v63 = vld [vmem:[#allocation2 + $0x28] sm:$0xff]  ;;  %v171_v6 = vld [vmem:[#allocation2 + $0x38] sm:$0xff] }
  0x45   :  { %v1615_v7 = vpack.c.bf16 %v166_v62, %v164_v61  ;;  %v1617_v8 = vpack.c.bf16 %v171_v6, %v169_v63  ;;  %v168_v9 = vld [vmem:[#allocation2 + $0x20] sm:$0xff]  ;;  %v170_v10 = vld [vmem:[#allocation2 + $0x30] sm:$0xff]  ;;  %v173_v11 = vld [vmem:[#allocation2 + $0x48] sm:$0xff] }
  0x46   :  { %v175_v12 = vld [vmem:[#allocation2 + $0x58] sm:$0xff]  ;;  %v1619_v13 = vpack.c.bf16 %v170_v10, %v168_v9  ;;  %v172_v15 = vld [vmem:[#allocation2 + $0x40] sm:$0xff]  ;;  %v174_v16 = vld [vmem:[#allocation2 + $0x50] sm:$0xff] }
  0x47   :  { %1596 = vmatpush1.bf16.msra.mxu1 %v1595_v35  ;;  %v1621_v14 = vpack.c.bf16 %v175_v12, %v173_v11  ;;  %v177_v17 = vld [vmem:[#allocation2 + $0x68] sm:$0xff]  ;;  %v179_v18 = vld [vmem:[#allocation2 + $0x78] sm:$0xff]  ;;  %v1623_v19 = vpack.c.bf16 %v174_v16, %v172_v15  ;;  %v178_v21 = vld [vmem:[#allocation2 + $0x70] sm:$0xff] }
  0x48   :  { %1598 = vmatprep.subr.bf16.mxu1 %v1597_v36  ;;  %v1625_v1 = vpack.c.bf16 %v179_v18, %v177_v17  ;;  %v181_v22 = vld [vmem:[#allocation2 + $0x88] sm:$0xff]  ;;  %v183_v23 = vld [vmem:[#allocation2 + $0x98] sm:$0xff]  ;;  %v180_v26 = vld [vmem:[#allocation2 + $0x80] sm:$0xff] }
  0x49   :  { %v1629_v25 = vpack.c.bf16 %v183_v23, %v181_v22  ;;  %v182_v27 = vld [vmem:[#allocation2 + $0x90] sm:$0xff]  ;;  %v185_v28 = vld [vmem:[#allocation2 + $0xa8] sm:$0xff]  ;;  %v187_v29 = vld [vmem:[#allocation2 + $0xb8] sm:$0xff] }
  0x4a   :  { %v1631_v2 = vpack.c.bf16 %v182_v27, %v180_v26  ;;  %v184_v30 = vld [vmem:[#allocation2 + $0xa0] sm:$0xff]  ;;  %v186_v31 = vld [vmem:[#allocation2 + $0xb0] sm:$0xff]  ;;  %v189_v32 = vld [vmem:[#allocation2 + $0xc8] sm:$0xff] }
  0x4b   :  { %1600 = vmatpush1.bf16.msra.mxu1 %v1599_v41  ;;  %v191_v33 = vld [vmem:[#allocation2 + $0xd8] sm:$0xff]  ;;  %v1635_v34 = vpack.c.bf16 %v186_v31, %v184_v30  ;;  %v188_v36 = vld [vmem:[#allocation2 + $0xc0] sm:$0xff]  ;;  %v190_v37 = vld [vmem:[#allocation2 + $0xd0] sm:$0xff] }
  0x4c   :  { %1602 = vmatprep.subr.bf16.mxu1 %v1601_v42  ;;  %v1637_v35 = vpack.c.bf16 %v191_v33, %v189_v32  ;;  %v193_v38 = vld [vmem:[#allocation2 + $0xe8] sm:$0xff]  ;;  %v195_v39 = vld [vmem:[#allocation2 + $0xf8] sm:$0xff]  ;;  %v1639_v40 = vpack.c.bf16 %v190_v37, %v188_v36  ;;  %v192_v42 = vld [vmem:[#allocation2 + $0xe0] sm:$0xff] }
  0x4d   :  { %v1641_v41 = vpack.c.bf16 %v195_v39, %v193_v38  ;;  %v194_v43 = vld [vmem:[#allocation2 + $0xf0] sm:$0xff]  ;;  %v469_v45 = vld [vmem:[#allocation2 + $0x208] sm:$0xff]  ;;  %v471_v46 = vld [vmem:[#allocation2 + $0x218] sm:$0xff] }
  0x4e   :  { %v1643_v44 = vpack.c.bf16 %v194_v43, %v192_v42  ;;  %v470_v49 = vld [vmem:[#allocation2 + $0x210] sm:$0xff]  ;;  %v473_v50 = vld [vmem:[#allocation2 + $0x228] sm:$0xff]  ;;  %v475_v51 = vld [vmem:[#allocation2 + $0x238] sm:$0xff] }
  0x4f   :  { %1604 = vmatpush1.bf16.msra.mxu1 %v1603_v47  ;;  %v1649_v47 = vpack.c.bf16 %v471_v46, %v469_v45  ;;  %v472_v55 = vld [vmem:[#allocation2 + $0x220] sm:$0xff]  ;;  %v474_v56 = vld [vmem:[#allocation2 + $0x230] sm:$0xff]  ;;  %v477_v58 = vld [vmem:[#allocation2 + $0x248] sm:$0xff] }
  0x50   :  { %1606 = vmatprep.subr.bf16.mxu1 %v1605_v48  ;;  %v468_v48 = vld [vmem:[#allocation2 + $0x200] sm:$0xff]  ;;  %v478_v63 = vld [vmem:[#allocation2 + $0x250] sm:$0xff]  ;;  %v487_v15 = vld [vmem:[#allocation2 + $0x298] sm:$0xff] }
  0x51   :  { %v1651_v52 = vpack.c.bf16 %v470_v49, %v468_v48  ;;  %v476_v62 = vld [vmem:[#allocation2 + $0x240] sm:$0xff]  ;;  %v495_v26 = vld [vmem:[#allocation2 + $0x2d8] sm:$0xff]  ;;  %v749_v46 = vld [vmem:[#allocation4 + $0x230] sm:$0xff] }
  0x52   :  { %v1659_v10 = vpack.c.bf16 %v478_v63, %v476_v62  ;;  %v480_v12 = vld [vmem:[#allocation2 + $0x260] sm:$0xff]  ;;  %v499_v30 = vld [vmem:[#allocation2 + $0x2f8] sm:$0xff] }
  0x53   :  { %1608 = vmatpush1.bf16.msra.mxu1 %v1607_v53  ;;  %v484_v18 = vld [vmem:[#allocation2 + $0x280] sm:$0xff]  ;;  %v746_v36 = vld [vmem:[#allocation4 + $0x218] sm:$0xff] }
  0x54   :  { %1610 = vmatprep.subr.bf16.mxu1 %v1609_v54  ;;  %v1653_v54 = vpack.c.bf16 %v475_v51, %v473_v50  ;;  %v488_v23 = vld [vmem:[#allocation2 + $0x2a0] sm:$0xff]  ;;  %v750_v42 = vld [vmem:[#allocation4 + $0x238] sm:$0xff] }
  0x55   :  { %v496_v33 = vld [vmem:[#allocation2 + $0x2e0] sm:$0xff]  ;;  %v754_v48 = vld [vmem:[#allocation4 + $0x258] sm:$0xff] }
  0x56   :  { %v743_v39 = vld [vmem:[#allocation4 + $0x200] sm:$0xff] }
  0x57   :  { %1612 = vmatpush1.bf16.msra.mxu1 %v1611_v59  ;;  %v479_v59 = vld [vmem:[#allocation2 + $0x258] sm:$0xff]  ;;  %v747_v45 = vld [vmem:[#allocation4 + $0x220] sm:$0xff] }
  0x58   :  { %1614 = vmatprep.subr.bf16.mxu1 %v1613_v60  ;;  %v1655_v60 = vpack.c.bf16 %v474_v56, %v472_v55  ;;  %v1657_v61 = vpack.c.bf16 %v479_v59, %v477_v58  ;;  %v1691_v49 = vpack.c.bf16 %v749_v46, %v747_v45  ;;  %v751_v51 = vld [vmem:[#allocation4 + $0x240] sm:$0xff]  ;;  %v757_v58 = vld [vmem:[#allocation4 + $0x270] sm:$0xff]  ;;  %v760_v59 = vld [vmem:[#allocation4 + $0x288] sm:$0xff] }
  0x59   :  { %v759_v63 = vld [vmem:[#allocation4 + $0x280] sm:$0xff]  ;;  %v789_v45 = vld [vmem:[#allocation4 + $0x370] sm:$0xff]  ;;  %v792_v46 = vld [vmem:[#allocation4 + $0x388] sm:$0xff] }
  0x5a   :  { %294 = vmatmul.mubr.f32.vlgmr.msra.gmra.mrb[0].mxu1 %v78_v4  ;;  %v176_v4 = vld [vmem:[#allocation2 + $0x60] sm:$0xff] }
  0x5b   :  { %1616 = vmatpush1.bf16.msra.mxu1 %v1615_v7  ;;  %299 = vmatprep.mubr.f32.mxu1 %v2066_v0  ;;  %v1627_v24 = vpack.c.bf16 %v178_v21, %v176_v4  ;;  %v481_v7 = vld [vmem:[#allocation2 + $0x268] sm:$0xff]  ;;  %v491_v4 = vld [vmem:[#allocation2 + $0x2b8] sm:$0xff] }
  0x5c   :  { %1618 = vmatprep.subr.bf16.mxu1 %v1617_v8  ;;  %v483_v8 = vld [vmem:[#allocation2 + $0x278] sm:$0xff] }
  0x5d   :  { %v1661_v11 = vpack.c.bf16 %v483_v8, %v481_v7  ;;  %v761_v7 = vld [vmem:[#allocation4 + $0x290] sm:$0xff]  ;;  %v764_v8 = vld [vmem:[#allocation4 + $0x2a8] sm:$0xff] }
  0x5e   :  { %300 = vmatmul.mubr.f32.gmra.mrb[2].mxu1 %v79_v5  ;;  %v1633_v5 = vpack.c.bf16 %v187_v29, %v185_v28  ;;  %v492_v29 = vld [vmem:[#allocation2 + $0x2c0] sm:$0xff] }
  0x5f   :  { %1620 = vmatpush1.bf16.msra.mxu1 %v1619_v13  ;;  %370 = vmatprep.mubr.f32.mxu1 %v2066_v0  ;;  %v482_v13 = vld [vmem:[#allocation2 + $0x270] sm:$0xff] }
  0x60   :  { %1622 = vmatprep.subr.bf16.mxu1 %v1621_v14  ;;  %v485_v14 = vld [vmem:[#allocation2 + $0x288] sm:$0xff]  ;;  %v1663_v16 = vpack.c.bf16 %v482_v13, %v480_v12  ;;  %v765_v12 = vld [vmem:[#allocation4 + $0x2b0] sm:$0xff] }
  0x61   :  { %v1665_v17 = vpack.c.bf16 %v487_v15, %v485_v14  ;;  %v768_v13 = vld [vmem:[#allocation4 + $0x2c8] sm:$0xff]  ;;  %v770_v14 = vld [vmem:[#allocation4 + $0x2d8] sm:$0xff] }
  0x63   :  { %1624 = vmatpush1.bf16.msra.mxu1 %v1623_v19  ;;  %v486_v19 = vld [vmem:[#allocation2 + $0x290] sm:$0xff] }
  0x64   :  { %1626 = vmatprep.subr.bf16.mxu1 %v1625_v1  ;;  %v489_v1 = vld [vmem:[#allocation2 + $0x2a8] sm:$0xff]  ;;  %v1667_v21 = vpack.c.bf16 %v486_v19, %v484_v18  ;;  %v769_v18 = vld [vmem:[#allocation4 + $0x2d0] sm:$0xff] }
  0x65   :  { %v1669_v22 = vpack.c.bf16 %v491_v4, %v489_v1  ;;  %v772_v19 = vld [vmem:[#allocation4 + $0x2e8] sm:$0xff]  ;;  %v774_v1 = vld [vmem:[#allocation4 + $0x2f8] sm:$0xff] }
  0x67   :  { %1628 = vmatpush1.bf16.msra.mxu1 %v1627_v24  ;;  %v490_v24 = vld [vmem:[#allocation2 + $0x2b0] sm:$0xff] }
  0x68   :  { %1630 = vmatprep.subr.bf16.mxu1 %v1629_v25  ;;  %v493_v25 = vld [vmem:[#allocation2 + $0x2c8] sm:$0xff]  ;;  %v1671_v27 = vpack.c.bf16 %v490_v24, %v488_v23  ;;  %v773_v23 = vld [vmem:[#allocation4 + $0x2f0] sm:$0xff] }
  0x69   :  { %v1673_v28 = vpack.c.bf16 %v495_v26, %v493_v25  ;;  %v776_v24 = vld [vmem:[#allocation4 + $0x308] sm:$0xff]  ;;  %v778_v25 = vld [vmem:[#allocation4 + $0x318] sm:$0xff] }
  0x6b   :  { %1632 = vmatpush1.bf16.msra.mxu1 %v1631_v2  ;;  %v494_v2 = vld [vmem:[#allocation2 + $0x2d0] sm:$0xff] }
  0x6c   :  { %1634 = vmatprep.subr.bf16.mxu1 %v1633_v5  ;;  %v497_v5 = vld [vmem:[#allocation2 + $0x2e8] sm:$0xff]  ;;  %v1675_v31 = vpack.c.bf16 %v494_v2, %v492_v29  ;;  %v777_v29 = vld [vmem:[#allocation4 + $0x310] sm:$0xff] }
  0x6d   :  { %v1677_v32 = vpack.c.bf16 %v499_v30, %v497_v5  ;;  %v780_v2 = vld [vmem:[#allocation4 + $0x328] sm:$0xff]  ;;  %v782_v5 = vld [vmem:[#allocation4 + $0x338] sm:$0xff] }
  0x6f   :  { %1636 = vmatpush1.bf16.msra.mxu1 %v1635_v34  ;;  %v498_v34 = vld [vmem:[#allocation2 + $0x2f0] sm:$0xff] }
  0x70   :  { %1638 = vmatprep.subr.bf16.mxu1 %v1637_v35  ;;  %v744_v35 = vld [vmem:[#allocation4 + $0x208] sm:$0xff]  ;;  %v1679_v37 = vpack.c.bf16 %v498_v34, %v496_v33  ;;  %v781_v33 = vld [vmem:[#allocation4 + $0x330] sm:$0xff] }
  0x71   :  { %v1685_v38 = vpack.c.bf16 %v746_v36, %v744_v35  ;;  %v784_v34 = vld [vmem:[#allocation4 + $0x348] sm:$0xff]  ;;  %v786_v35 = vld [vmem:[#allocation4 + $0x358] sm:$0xff] }
  0x73   :  { %1640 = vmatpush1.bf16.msra.mxu1 %v1639_v40  ;;  %v745_v40 = vld [vmem:[#allocation4 + $0x210] sm:$0xff] }
  0x74   :  { %1642 = vmatprep.subr.bf16.mxu1 %v1641_v41  ;;  %v748_v41 = vld [vmem:[#allocation4 + $0x228] sm:$0xff]  ;;  %v1687_v43 = vpack.c.bf16 %v745_v40, %v743_v39  ;;  %v785_v39 = vld [vmem:[#allocation4 + $0x350] sm:$0xff] }
  0x75   :  { %v788_v40 = vld [vmem:[#allocation4 + $0x368] sm:$0xff] }
  0x77   :  { %1644 = vmatpush1.bf16.msra.mxu1 %v1643_v44  ;;  %v1689_v44 = vpack.c.bf16 %v750_v42, %v748_v41  ;;  %v790_v41 = vld [vmem:[#allocation4 + $0x378] sm:$0xff] }
  0x78   :  { %1650 = vmatprep.subr.bf16.mxu1 %v1649_v47  ;;  %v752_v47 = vld [vmem:[#allocation4 + $0x248] sm:$0xff] }
  0x79   :  { %v1693_v50 = vpack.c.bf16 %v754_v48, %v752_v47  ;;  %v794_v47 = vld [vmem:[#allocation4 + $0x398] sm:$0xff] }
 0x112   :  { %v1569_v53 = vpop.f32.mrb[0].mxu0 }
 0x113   :  { %v155_v57 = vpop.f32.mrb[1].mxu0 }
 0x114   :  { %371 = vmatmul.mubr.f32.vlgmr.msra.gmra.mrb[0].mxu1 %v155_v57  ;;  %v755_v57 = vld [vmem:[#allocation4 + $0x260] sm:$0xff] }
 0x115   :  { %1652 = vmatpush1.bf16.msra.mxu1 %v1651_v52  ;;  %376 = vmatprep.mubr.f32.mxu1 %v2066_v0  ;;  %v753_v52 = vld [vmem:[#allocation4 + $0x250] sm:$0xff] }
 0x116   :  { %1654 = vmatprep.subr.bf16.mxu1 %v1653_v54  ;;  %v2212_v6 = vpop.f32.mrb[2].mxu0  ;;  %v758_v54 = vld [vmem:[#allocation4 + $0x278] sm:$0xff]  ;;  %v1695_v55 = vpack.c.bf16 %v753_v52, %v751_v51  ;;  %v793_v51 = vld [vmem:[#allocation4 + $0x390] sm:$0xff]  ;;  %v796_v52 = vld [vmem:[#allocation4 + $0x3a8] sm:$0xff] }
 0x117   :  { %v458_v9 = vpop.f32.mrb[3].mxu0 }
 0x118   :  { %377 = vmatmul.mubr.f32.gmra.mrb[2].mxu1 %v1569_v53  ;;  %v756_v53 = vld [vmem:[#allocation4 + $0x268] sm:$0xff] }
 0x119   :  { %1656 = vmatpush1.bf16.msra.mxu1 %v1655_v60  ;;  %564 = vmatprep.mubr.f32.mxu1 %v2066_v0  ;;  %v1697_v56 = vpack.c.bf16 %v758_v54, %v756_v53  ;;  %v762_v60 = vld [vmem:[#allocation4 + $0x298] sm:$0xff] }
 0x11a   :  { %1658 = vmatprep.subr.bf16.mxu1 %v1657_v61  ;;  %v1699_v61 = vpack.c.bf16 %v757_v58, %v755_v57  ;;  %v1701_v62 = vpack.c.bf16 %v762_v60, %v760_v59  ;;  %v798_v53 = vld [vmem:[#allocation4 + $0x3b8] sm:$0xff]  ;;  %v797_v57 = vld [vmem:[#allocation4 + $0x3b0] sm:$0xff]  ;;  %v800_v58 = vld [vmem:[#allocation4 + $0x3c8] sm:$0xff] }
 0x11b   :  { %v802_v59 = vld [vmem:[#allocation4 + $0x3d8] sm:$0xff] }
 0x11d   :  { %1660 = vmatpush1.bf16.msra.mxu1 %v1659_v10  ;;  %v1703_v10 = vpack.c.bf16 %v761_v7, %v759_v63  ;;  %v801_v63 = vld [vmem:[#allocation4 + $0x3d0] sm:$0xff] }
 0x11e   :  { %1662 = vmatprep.subr.bf16.mxu1 %v1661_v11  ;;  %v763_v11 = vld [vmem:[#allocation4 + $0x2a0] sm:$0xff] }
 0x11f   :  { %v1707_v15 = vpack.c.bf16 %v765_v12, %v763_v11  ;;  %v805_v11 = vld [vmem:[#allocation4 + $0x3f0] sm:$0xff] }
 0x121   :  { %1664 = vmatpush1.bf16.msra.mxu1 %v1663_v16  ;;  %v1709_v16 = vpack.c.bf16 %v770_v14, %v768_v13  ;;  %v583_v13 = vlaneseq }
 0x122   :  { %1666 = vmatprep.subr.bf16.mxu1 %v1665_v17  ;;  %v767_v17 = vld [vmem:[#allocation4 + $0x2c0] sm:$0xff] }
 0x123   :  { %v1711_v4 = vpack.c.bf16 %v769_v18, %v767_v17  ;;  %v584_v14 = vshrl.u32 %v583_v13, 7  ;;  %v709_v13 = vld [vmem:[#allocation4 + $0xf8] sm:$0xff] }
 0x125   :  { %1668 = vmatpush1.bf16.msra.mxu1 %v1667_v21  ;;  %v1713_v21 = vpack.c.bf16 %v774_v1, %v772_v19  ;;  %v2222_v17 = vsub.s32 1, %v584_v14 }
 0x126   :  { %1670 = vmatprep.subr.bf16.mxu1 %v1669_v22  ;;  %v771_v22 = vld [vmem:[#allocation4 + $0x2e0] sm:$0xff] }
 0x127   :  { %v1715_v26 = vpack.c.bf16 %v773_v23, %v771_v22 }
 0x129   :  { %1672 = vmatpush1.bf16.msra.mxu1 %v1671_v27  ;;  %v1717_v27 = vpack.c.bf16 %v778_v25, %v776_v24 }
 0x12a   :  { %1674 = vmatprep.subr.bf16.mxu1 %v1673_v28  ;;  %v775_v28 = vld [vmem:[#allocation4 + $0x300] sm:$0xff] }
 0x12b   :  { %v1719_v30 = vpack.c.bf16 %v777_v29, %v775_v28 }
 0x12d   :  { %1676 = vmatpush1.bf16.msra.mxu1 %v1675_v31  ;;  %v1721_v31 = vpack.c.bf16 %v782_v5, %v780_v2  ;;  %v679_v2 = vld [vmem:[#allocation4 + $0x8] sm:$0xff]  ;;  %v681_v5 = vld [vmem:[#allocation4 + $0x18] sm:$0xff] }
 0x12e   :  { %1678 = vmatprep.subr.bf16.mxu1 %v1677_v32  ;;  %v779_v32 = vld [vmem:[#allocation4 + $0x320] sm:$0xff] }
 0x12f   :  { %v1723_v36 = vpack.c.bf16 %v781_v33, %v779_v32  ;;  %v1749_v33 = vpack.c.bf16 %v681_v5, %v679_v2  ;;  %v716_v2 = vld [vmem:[#allocation4 + $0x130] sm:$0xff]  ;;  %v719_v5 = vld [vmem:[#allocation4 + $0x148] sm:$0xff] }
 0x131   :  { %1680 = vmatpush1.bf16.msra.mxu1 %v1679_v37  ;;  %v1725_v37 = vpack.c.bf16 %v786_v35, %v784_v34  ;;  %v678_v34 = vld [vmem:[#allocation4] sm:$0xff]  ;;  %v680_v35 = vld [vmem:[#allocation4 + $0x10] sm:$0xff] }
 0x132   :  { %1686 = vmatprep.subr.bf16.mxu1 %v1685_v38  ;;  %v783_v38 = vld [vmem:[#allocation4 + $0x340] sm:$0xff] }
 0x133   :  { %v1727_v42 = vpack.c.bf16 %v785_v39, %v783_v38  ;;  %v1751_v38 = vpack.c.bf16 %v680_v35, %v678_v34  ;;  %v718_v35 = vld [vmem:[#allocation4 + $0x140] sm:$0xff] }
 0x134   :  { %565 = vmatmul.mubr.f32.vlgmr.msra.gmra.mrb[0].mxu1 %v458_v9  ;;  %v766_v9 = vld [vmem:[#allocation4 + $0x2b8] sm:$0xff] }
 0x135   :  { %570 = vmatprep.mubr.f32.mxu1 %v2066_v0  ;;  %1688 = vmatpush1.bf16.msra.mxu1 %v1687_v43  ;;  %v1729_v43 = vpack.c.bf16 %v790_v41, %v788_v40  ;;  %v682_v40 = vld [vmem:[#allocation4 + $0x20] sm:$0xff]  ;;  %v684_v41 = vld [vmem:[#allocation4 + $0x30] sm:$0xff] }
 0x136   :  { %1690 = vmatprep.subr.bf16.mxu1 %v1689_v44  ;;  %v787_v44 = vld [vmem:[#allocation4 + $0x360] sm:$0xff] }
 0x137   :  { %v1731_v48 = vpack.c.bf16 %v789_v45, %v787_v44  ;;  %v1755_v44 = vpack.c.bf16 %v684_v41, %v682_v40  ;;  %v722_v41 = vld [vmem:[#allocation4 + $0x160] sm:$0xff] }
 0x138   :  { %571 = vmatmul.mubr.f32.gmra.mrb[2].mxu1 %v2212_v6  ;;  %v1705_v6 = vpack.c.bf16 %v766_v9, %v764_v8  ;;  %v804_v8 = vld [vmem:[#allocation4 + $0x3e8] sm:$0xff]  ;;  %v806_v9 = vld [vmem:[#allocation4 + $0x3f8] sm:$0xff] }
 0x139   :  { %1692 = vmatpush1.bf16.msra.mxu1 %v1691_v49  ;;  %v1733_v49 = vpack.c.bf16 %v794_v47, %v792_v46  ;;  %v686_v46 = vld [vmem:[#allocation4 + $0x40] sm:$0xff]  ;;  %v688_v47 = vld [vmem:[#allocation4 + $0x50] sm:$0xff] }
 0x13a   :  { %1694 = vmatprep.subr.bf16.mxu1 %v1693_v50  ;;  %v791_v50 = vld [vmem:[#allocation4 + $0x380] sm:$0xff] }
 0x13b   :  { %v1735_v54 = vpack.c.bf16 %v793_v51, %v791_v50  ;;  %v1759_v50 = vpack.c.bf16 %v688_v47, %v686_v46  ;;  %v726_v47 = vld [vmem:[#allocation4 + $0x180] sm:$0xff] }
 0x13d   :  { %1696 = vmatpush1.bf16.msra.mxu1 %v1695_v55  ;;  %v1737_v55 = vpack.c.bf16 %v798_v53, %v796_v52  ;;  %v690_v52 = vld [vmem:[#allocation4 + $0x60] sm:$0xff]  ;;  %v692_v53 = vld [vmem:[#allocation4 + $0x70] sm:$0xff] }
 0x13e   :  { %1698 = vmatprep.subr.bf16.mxu1 %v1697_v56  ;;  %v795_v56 = vld [vmem:[#allocation4 + $0x3a0] sm:$0xff] }
 0x13f   :  { %v1739_v60 = vpack.c.bf16 %v797_v57, %v795_v56  ;;  %v694_v57 = vld [vmem:[#allocation4 + $0x80] sm:$0xff] }
 0x141   :  { %1700 = vmatpush1.bf16.msra.mxu1 %v1699_v61  ;;  %v1741_v61 = vpack.c.bf16 %v802_v59, %v800_v58  ;;  %v696_v58 = vld [vmem:[#allocation4 + $0x90] sm:$0xff]  ;;  %v699_v59 = vld [vmem:[#allocation4 + $0xa8] sm:$0xff] }
 0x142   :  { %1702 = vmatprep.subr.bf16.mxu1 %v1701_v62  ;;  %v799_v62 = vld [vmem:[#allocation4 + $0x3c0] sm:$0xff] }
 0x143   :  { %v1743_v7 = vpack.c.bf16 %v801_v63, %v799_v62  ;;  %v698_v62 = vld [vmem:[#allocation4 + $0xa0] sm:$0xff]  ;;  %v700_v63 = vld [vmem:[#allocation4 + $0xb0] sm:$0xff] }
 0x145   :  { %1704 = vmatpush1.bf16.msra.mxu1 %v1703_v10  ;;  %v1745_v10 = vpack.c.bf16 %v806_v9, %v804_v8  ;;  %v705_v8 = vld [vmem:[#allocation4 + $0xd8] sm:$0xff]  ;;  %v1771_v9 = vpack.c.bf16 %v700_v63, %v698_v62  ;;  %v738_v63 = vld [vmem:[#allocation4 + $0x1e0] sm:$0xff] }
 0x146   :  { %1706 = vmatprep.subr.bf16.mxu1 %v1705_v6  ;;  %v803_v6 = vld [vmem:[#allocation4 + $0x3e0] sm:$0xff] }
 0x147   :  { %v1747_v12 = vpack.c.bf16 %v805_v11, %v803_v6  ;;  %v702_v6 = vld [vmem:[#allocation4 + $0xc0] sm:$0xff]  ;;  %v704_v11 = vld [vmem:[#allocation4 + $0xd0] sm:$0xff] }
 0x149   :  { %1708 = vmatpush1.bf16.msra.mxu1 %v1707_v15  ;;  %v2217_v15 = vsub.s32 0, %v584_v14  ;;  %v1775_v14 = vpack.c.bf16 %v704_v11, %v702_v6 }
 0x14a   :  { %1710 = vmatprep.subr.bf16.mxu1 %v1709_v16  ;;  %v581_v16 = vld [vmem:[%s2385_s2] sm:$0x3] }
 0x14b   :  { %v586_v18 = vrot.slane %v581_v16, %v2217_v15  ;;  %v590_v19 = vrot.slane %v581_v16, %v2222_v17 }
 0x14d   :  { %1712 = vmatpush1.bf16.msra.mxu1 %v1711_v4 }
 0x14e   :  { %1714 = vmatprep.subr.bf16.mxu1 %v1713_v21 }
 0x151   :  { %1716 = vmatpush1.bf16.msra.mxu1 %v1715_v26 }
 0x152   :  { %1718 = vmatprep.subr.bf16.mxu1 %v1717_v27 }
 0x155   :  { %1720 = vmatpush1.bf16.msra.mxu1 %v1719_v30 }
 0x156   :  { %1722 = vmatprep.subr.bf16.mxu1 %v1721_v31 }
 0x159   :  { %1724 = vmatpush1.bf16.msra.mxu1 %v1723_v36  ;;  %v683_v36 = vld [vmem:[#allocation4 + $0x28] sm:$0xff] }
 0x15a   :  { %1726 = vmatprep.subr.bf16.mxu1 %v1725_v37  ;;  %v685_v37 = vld [vmem:[#allocation4 + $0x38] sm:$0xff] }
 0x15b   :  { %v1753_v39 = vpack.c.bf16 %v685_v37, %v683_v36  ;;  %v720_v36 = vld [vmem:[#allocation4 + $0x150] sm:$0xff]  ;;  %v723_v37 = vld [vmem:[#allocation4 + $0x168] sm:$0xff] }
 0x15d   :  { %1728 = vmatpush1.bf16.msra.mxu1 %v1727_v42  ;;  %v687_v42 = vld [vmem:[#allocation4 + $0x48] sm:$0xff] }
 0x15e   :  { %1730 = vmatprep.subr.bf16.mxu1 %v1729_v43  ;;  %v689_v43 = vld [vmem:[#allocation4 + $0x58] sm:$0xff] }
 0x15f   :  { %v1757_v45 = vpack.c.bf16 %v689_v43, %v687_v42  ;;  %v724_v42 = vld [vmem:[#allocation4 + $0x170] sm:$0xff]  ;;  %v727_v43 = vld [vmem:[#allocation4 + $0x188] sm:$0xff] }
 0x161   :  { %1732 = vmatpush1.bf16.msra.mxu1 %v1731_v48  ;;  %v691_v48 = vld [vmem:[#allocation4 + $0x68] sm:$0xff] }
 0x162   :  { %1734 = vmatprep.subr.bf16.mxu1 %v1733_v49  ;;  %v693_v49 = vld [vmem:[#allocation4 + $0x78] sm:$0xff] }
 0x163   :  { %v1761_v51 = vpack.c.bf16 %v693_v49, %v691_v48  ;;  %v728_v48 = vld [vmem:[#allocation4 + $0x190] sm:$0xff]  ;;  %v731_v49 = vld [vmem:[#allocation4 + $0x1a8] sm:$0xff] }
 0x165   :  { %1736 = vmatpush1.bf16.msra.mxu1 %v1735_v54  ;;  %v697_v54 = vld [vmem:[#allocation4 + $0x98] sm:$0xff] }
 0x166   :  { %1738 = vmatprep.subr.bf16.mxu1 %v1737_v55  ;;  %v1763_v55 = vpack.c.bf16 %v692_v53, %v690_v52  ;;  %v730_v53 = vld [vmem:[#allocation4 + $0x1a0] sm:$0xff] }
 0x169   :  { %1740 = vmatpush1.bf16.msra.mxu1 %v1739_v60  ;;  %v701_v60 = vld [vmem:[#allocation4 + $0xb8] sm:$0xff] }
 0x16a   :  { %1742 = vmatprep.subr.bf16.mxu1 %v1741_v61  ;;  %v1767_v61 = vpack.c.bf16 %v696_v58, %v694_v57  ;;  %v734_v58 = vld [vmem:[#allocation4 + $0x1c0] sm:$0xff] }
 0x16d   :  { %1744 = vmatpush1.bf16.msra.mxu1 %v1743_v7  ;;  %v703_v7 = vld [vmem:[#allocation4 + $0xc8] sm:$0xff] }
 0x16e   :  { %1746 = vmatprep.subr.bf16.mxu1 %v1745_v10  ;;  %v1773_v10 = vpack.c.bf16 %v705_v8, %v703_v7  ;;  %v740_v7 = vld [vmem:[#allocation4 + $0x1f0] sm:$0xff] }
 0x16f   :  { %v1811_v8 = vpack.c.bf16 %v740_v7, %v738_v63  ;;  %v1074_v63 = vld [vmem:[#allocation4 + $0x518] sm:$0xff] }
 0x171   :  { %1748 = vmatpush1.bf16.msra.mxu1 %v1747_v12  ;;  %v707_v12 = vld [vmem:[#allocation4 + $0xe8] sm:$0xff] }
 0x172   :  { %v1777_v16 = vpack.c.bf16 %v709_v13, %v707_v12  ;;  %v1040_v12 = vld [vmem:[#allocation4 + $0x408] sm:$0xff]  ;;  %v1042_v13 = vld [vmem:[#allocation4 + $0x418] sm:$0xff] }
 0x207   :  { %v566_v1 = vpop.f32.mrb[0].mxu1 }
 0x208   :  { %v593_v4 = vadd.f32 %v586_v18, %v566_v1  ;;  %v568_v21 = vpop.f32.mrb[1].mxu1  ;;  %v711_v1 = vld [vmem:[#allocation4 + $0x108] sm:$0xff] }
 0x209   :  { %v594_v22 = vadd.f32 %v590_v19, %v568_v21 }
 0x20a   :  { %v597_v25 = vmax.f32 %v593_v4, 0.0  ;;  %v713_v4 = vld [vmem:[#allocation4 + $0x118] sm:$0xff] }
 0x20b   :  { %v598_v23 = vmax.f32 %v594_v22, 0.0  ;;  %v572_v24 = vpop.f32.mrb[2].mxu1  ;;  %v1781_v22 = vpack.c.bf16 %v713_v4, %v711_v1  ;;  %v1041_v4 = vld [vmem:[#allocation4 + $0x410] sm:$0xff] }
 0x20c   :  { %v595_v26 = vadd.f32 %v586_v18, %v572_v24  ;;  %v574_v27 = vpop.f32.mrb[3].mxu1  ;;  %v706_v18 = vld [vmem:[#allocation4 + $0xe0] sm:$0xff]  ;;  %v712_v24 = vld [vmem:[#allocation4 + $0x110] sm:$0xff] }
 0x20d   :  { %v596_v28 = vadd.f32 %v590_v19, %v574_v27  ;;  %871 = vmatprep.mubr.f32.mxu1 %v598_v23  ;;  %v708_v19 = vld [vmem:[#allocation4 + $0xf0] sm:$0xff] }
 0x20e   :  { %v599_v29 = vmax.f32 %v595_v26, 0.0  ;;  %872 = vmatmul.mubr.f32.vlgmr.msra.gmra.mrb[4].mxu1 %v597_v25  ;;  %v1779_v21 = vpack.c.bf16 %v708_v19, %v706_v18  ;;  %v717_v26 = vld [vmem:[#allocation4 + $0x138] sm:$0xff]  ;;  %v1817_v18 = vpack.c.bf16 %v1042_v13, %v1040_v12  ;;  %v1071_v12 = vld [vmem:[#allocation4 + $0x500] sm:$0xff]  ;;  %v1073_v13 = vld [vmem:[#allocation4 + $0x510] sm:$0xff] }
 0x20f   :  { %v600_v30 = vmax.f32 %v596_v28, 0.0 }
 0x210   :  { %v2226_v31 = vpack.c.bf16 %v599_v29, %v597_v25  ;;  %v715_v25 = vld [vmem:[#allocation4 + $0x128] sm:$0xff] }
 0x211   :  { %v2228_v32 = vpack.c.bf16 %v600_v30, %v598_v23  ;;  %877 = vmatprep.mubr.f32.mxu1 %v600_v30  ;;  %v710_v23 = vld [vmem:[#allocation4 + $0x100] sm:$0xff]  ;;  %v1785_v28 = vpack.c.bf16 %v717_v26, %v715_v25  ;;  %v721_v30 = vld [vmem:[#allocation4 + $0x158] sm:$0xff]  ;;  %v1045_v26 = vld [vmem:[#allocation4 + $0x430] sm:$0xff] }
 0x212   :  { %878 = vmatmul.mubr.f32.gmra.mrb[6].mxu1 %v599_v29  ;;  %v1783_v27 = vpack.c.bf16 %v712_v24, %v710_v23  ;;  %v714_v29 = vld [vmem:[#allocation4 + $0x120] sm:$0xff]  ;;  %v1789_v34 = vpack.c.bf16 %v721_v30, %v719_v5  ;;  %v1049_v30 = vld [vmem:[#allocation4 + $0x450] sm:$0xff] }
 0x213   :  { %1682 = vmatprep.subr.bf16.mxu0 %v2228_v32  ;;  %v1043_v25 = vld [vmem:[#allocation4 + $0x420] sm:$0xff] }
 0x214   :  { %1684 = vmatpush1.bf16.msra.mxu0 %v2226_v31  ;;  %v1047_v5 = vld [vmem:[#allocation4 + $0x440] sm:$0xff] }
 0x215   :  { %1750 = vmatprep.subr.bf16.mxu0 %v1749_v33  ;;  %v1787_v33 = vpack.c.bf16 %v716_v2, %v714_v29  ;;  %v1823_v29 = vpack.c.bf16 %v1045_v26, %v1043_v25  ;;  %v1081_v25 = vld [vmem:[#allocation4 + $0x550] sm:$0xff]  ;;  %v1084_v26 = vld [vmem:[#allocation4 + $0x568] sm:$0xff] }
 0x217   :  { %1515 = vmatmul.mubr.msk.f32.vlgmr.msra.gmra.mrb[4].mxu0 %vm82_vm0, %v2179_v3  ;;  %v695_v3 = vld [vmem:[#allocation4 + $0x88] sm:$0xff] }
 0x218   :  { %1752 = vmatpush1.bf16.msra.mxu0 %v1751_v38  ;;  %671 = vmatprep.mubr.f32.mxu0 %v2066_v0  ;;  %v1765_v56 = vpack.c.bf16 %v697_v54, %v695_v3  ;;  %v725_v38 = vld [vmem:[#allocation4 + $0x178] sm:$0xff]  ;;  %v732_v3 = vld [vmem:[#allocation4 + $0x1b0] sm:$0xff]  ;;  %v735_v54 = vld [vmem:[#allocation4 + $0x1c8] sm:$0xff] }
 0x219   :  { %1754 = vmatprep.subr.bf16.mxu0 %v1753_v39  ;;  %v1791_v39 = vpack.c.bf16 %v720_v36, %v718_v35  ;;  %v1793_v40 = vpack.c.bf16 %v725_v38, %v723_v37  ;;  %v1986_v35 = vld [vmem:[%s2390_s7 + $0x28] sm:$0xff]  ;;  %v1827_v36 = vpack.c.bf16 %v1049_v30, %v1047_v5  ;;  %v1051_v38 = vld [vmem:[#allocation4 + $0x460] sm:$0xff]  ;;  %v1090_v30 = vld [vmem:[#allocation4 + $0x598] sm:$0xff] }
 0x21a   :  { %v1088_v5 = vld [vmem:[#allocation4 + $0x588] sm:$0xff] }
 0x21b   :  { %1516 = vmatmul.mubr.msk.f32.gmra.mrb[6].mxu0 %vm82_vm0, %v2192_v20  ;;  %v1769_v20 = vpack.c.bf16 %v701_v60, %v699_v59  ;;  %v736_v59 = vld [vmem:[#allocation4 + $0x1d0] sm:$0xff]  ;;  %v739_v60 = vld [vmem:[#allocation4 + $0x1e8] sm:$0xff] }
 0x21c   :  { %1756 = vmatpush1.bf16.msra.mxu0 %v1755_v44  ;;  %v729_v44 = vld [vmem:[#allocation4 + $0x198] sm:$0xff] }
 0x21d   :  { %1758 = vmatprep.subr.bf16.mxu0 %v1757_v45  ;;  %v1795_v45 = vpack.c.bf16 %v724_v42, %v722_v41  ;;  %v1797_v46 = vpack.c.bf16 %v729_v44, %v727_v43  ;;  %v1058_v41 = vld [vmem:[#allocation4 + $0x498] sm:$0xff]  ;;  %v1055_v44 = vld [vmem:[#allocation4 + $0x480] sm:$0xff] }
 0x220   :  { %1760 = vmatpush1.bf16.msra.mxu0 %v1759_v50  ;;  %v733_v50 = vld [vmem:[#allocation4 + $0x1b8] sm:$0xff] }
 0x221   :  { %1762 = vmatprep.subr.bf16.mxu0 %v1761_v51  ;;  %v1799_v51 = vpack.c.bf16 %v728_v48, %v726_v47  ;;  %v1801_v52 = vpack.c.bf16 %v733_v50, %v731_v49  ;;  %v1062_v47 = vld [vmem:[#allocation4 + $0x4b8] sm:$0xff]  ;;  %v1059_v50 = vld [vmem:[#allocation4 + $0x4a0] sm:$0xff] }
 0x224   :  { %1764 = vmatpush1.bf16.msra.mxu0 %v1763_v55  ;;  %v737_v55 = vld [vmem:[#allocation4 + $0x1d8] sm:$0xff] }
 0x225   :  { %1766 = vmatprep.subr.bf16.mxu0 %v1765_v56  ;;  %v1803_v56 = vpack.c.bf16 %v732_v3, %v730_v53  ;;  %v1805_v57 = vpack.c.bf16 %v737_v55, %v735_v54  ;;  %v1066_v53 = vld [vmem:[#allocation4 + $0x4d8] sm:$0xff]  ;;  %v1063_v55 = vld [vmem:[#allocation4 + $0x4c0] sm:$0xff] }
 0x228   :  { %1768 = vmatpush1.bf16.msra.mxu0 %v1767_v61  ;;  %v741_v61 = vld [vmem:[#allocation4 + $0x1f8] sm:$0xff] }
 0x229   :  { %1770 = vmatprep.subr.bf16.mxu0 %v1769_v20  ;;  %v1807_v20 = vpack.c.bf16 %v736_v59, %v734_v58  ;;  %v1809_v62 = vpack.c.bf16 %v741_v61, %v739_v60  ;;  %v1070_v58 = vld [vmem:[#allocation4 + $0x4f8] sm:$0xff]  ;;  %v1067_v61 = vld [vmem:[#allocation4 + $0x4e0] sm:$0xff] }
 0x22c   :  { %1772 = vmatpush1.bf16.msra.mxu0 %v1771_v9 }
 0x22d   :  { %1774 = vmatprep.subr.bf16.mxu0 %v1773_v10 }
 0x230   :  { %1776 = vmatpush1.bf16.msra.mxu0 %v1775_v14 }
 0x231   :  { %1778 = vmatprep.subr.bf16.mxu0 %v1777_v16 }
 0x234   :  { %1780 = vmatpush1.bf16.msra.mxu0 %v1779_v21  ;;  %v1044_v21 = vld [vmem:[#allocation4 + $0x428] sm:$0xff] }
 0x235   :  { %1782 = vmatprep.subr.bf16.mxu0 %v1781_v22  ;;  %v1046_v22 = vld [vmem:[#allocation4 + $0x438] sm:$0xff] }
 0x236   :  { %v1821_v24 = vpack.c.bf16 %v1046_v22, %v1044_v21  ;;  %v1082_v21 = vld [vmem:[#allocation4 + $0x558] sm:$0xff] }
 0x238   :  { %1784 = vmatpush1.bf16.msra.mxu0 %v1783_v27  ;;  %v1048_v27 = vld [vmem:[#allocation4 + $0x448] sm:$0xff] }
 0x239   :  { %1786 = vmatprep.subr.bf16.mxu0 %v1785_v28  ;;  %v1050_v28 = vld [vmem:[#allocation4 + $0x458] sm:$0xff] }
 0x23a   :  { %v1825_v2 = vpack.c.bf16 %v1050_v28, %v1048_v27  ;;  %v1086_v27 = vld [vmem:[#allocation4 + $0x578] sm:$0xff] }
 0x23c   :  { %1788 = vmatpush1.bf16.msra.mxu0 %v1787_v33  ;;  %v1052_v33 = vld [vmem:[#allocation4 + $0x468] sm:$0xff] }
 0x23d   :  { %1790 = vmatprep.subr.bf16.mxu0 %v1789_v34  ;;  %v1054_v34 = vld [vmem:[#allocation4 + $0x478] sm:$0xff] }
 0x23e   :  { %v1829_v37 = vpack.c.bf16 %v1054_v34, %v1052_v33  ;;  %v1865_v34 = vpack.c.bf16 %v1090_v30, %v1088_v5  ;;  %v1218_v5 = vld [vmem:[%s2388_s5 + $0x90] sm:$0xff]  ;;  %v1221_v30 = vld [vmem:[%s2388_s5 + $0xa8] sm:$0xff] }
 0x240   :  { %1792 = vmatpush1.bf16.msra.mxu0 %v1791_v39  ;;  %v1053_v39 = vld [vmem:[#allocation4 + $0x470] sm:$0xff] }
 0x241   :  { %1794 = vmatprep.subr.bf16.mxu0 %v1793_v40  ;;  %v1056_v40 = vld [vmem:[#allocation4 + $0x488] sm:$0xff]  ;;  %v1831_v42 = vpack.c.bf16 %v1053_v39, %v1051_v38  ;;  %v1094_v38 = vld [vmem:[#allocation4 + $0x5b8] sm:$0xff] }
 0x242   :  { %v1833_v43 = vpack.c.bf16 %v1058_v41, %v1056_v40  ;;  %v1091_v41 = vld [vmem:[#allocation4 + $0x5a0] sm:$0xff] }
 0x244   :  { %1796 = vmatpush1.bf16.msra.mxu0 %v1795_v45  ;;  %v1057_v45 = vld [vmem:[#allocation4 + $0x490] sm:$0xff] }
 0x245   :  { %1798 = vmatprep.subr.bf16.mxu0 %v1797_v46  ;;  %v1060_v46 = vld [vmem:[#allocation4 + $0x4a8] sm:$0xff]  ;;  %v1835_v48 = vpack.c.bf16 %v1057_v45, %v1055_v44  ;;  %v1098_v44 = vld [vmem:[#allocation4 + $0x5d8] sm:$0xff] }
 0x246   :  { %v1837_v49 = vpack.c.bf16 %v1062_v47, %v1060_v46  ;;  %v1095_v47 = vld [vmem:[#allocation4 + $0x5c0] sm:$0xff] }
 0x248   :  { %1800 = vmatpush1.bf16.msra.mxu0 %v1799_v51  ;;  %v1061_v51 = vld [vmem:[#allocation4 + $0x4b0] sm:$0xff] }
 0x249   :  { %1802 = vmatprep.subr.bf16.mxu0 %v1801_v52  ;;  %v1064_v52 = vld [vmem:[#allocation4 + $0x4c8] sm:$0xff]  ;;  %v1839_v3 = vpack.c.bf16 %v1061_v51, %v1059_v50  ;;  %v1102_v50 = vld [vmem:[#allocation4 + $0x5f8] sm:$0xff] }
 0x24a   :  { %v1841_v54 = vpack.c.bf16 %v1066_v53, %v1064_v52  ;;  %v1099_v53 = vld [vmem:[#allocation4 + $0x5e0] sm:$0xff] }
 0x24c   :  { %1804 = vmatpush1.bf16.msra.mxu0 %v1803_v56  ;;  %v1065_v56 = vld [vmem:[#allocation4 + $0x4d0] sm:$0xff] }
 0x24d   :  { %1806 = vmatprep.subr.bf16.mxu0 %v1805_v57  ;;  %v1068_v57 = vld [vmem:[#allocation4 + $0x4e8] sm:$0xff]  ;;  %v1843_v59 = vpack.c.bf16 %v1065_v56, %v1063_v55  ;;  %v1203_v56 = vld [vmem:[%s2388_s5 + $0x18] sm:$0xff] }
 0x24e   :  { %v1845_v60 = vpack.c.bf16 %v1070_v58, %v1068_v57  ;;  %v1201_v55 = vld [vmem:[%s2388_s5 + $0x8] sm:$0xff]  ;;  %v1200_v58 = vld [vmem:[%s2388_s5] sm:$0xff] }
 0x24f   :  { %v1881_v57 = vpack.c.bf16 %v1203_v56, %v1201_v55  ;;  %v1401_v56 = vld [vmem:[#allocation6 + $0x8] sm:$0xff] }
 0x250   :  { %1808 = vmatpush1.bf16.msra.mxu0 %v1807_v20  ;;  %v1069_v20 = vld [vmem:[#allocation4 + $0x4f0] sm:$0xff] }
 0x251   :  { %1810 = vmatprep.subr.bf16.mxu0 %v1809_v62  ;;  %v1072_v62 = vld [vmem:[#allocation4 + $0x508] sm:$0xff]  ;;  %v1847_v7 = vpack.c.bf16 %v1069_v20, %v1067_v61  ;;  %v1207_v61 = vld [vmem:[%s2388_s5 + $0x38] sm:$0xff] }
 0x254   :  { %1812 = vmatpush1.bf16.msra.mxu0 %v1811_v8  ;;  %v1849_v8 = vpack.c.bf16 %v1074_v63, %v1072_v62 }
 0x255   :  { %1814 = vmatprep.subr.bf16.mxu0 %v2228_v32  ;;  %v1039_v32 = vld [vmem:[#allocation4 + $0x400] sm:$0xff] }
 0x256   :  { %v1819_v23 = vpack.c.bf16 %v1041_v4, %v1039_v32  ;;  %v1077_v32 = vld [vmem:[#allocation4 + $0x530] sm:$0xff]  ;;  %v1080_v4 = vld [vmem:[#allocation4 + $0x548] sm:$0xff] }
 0x2e1   :  { %v2238_v9 = vpop.f32.mrb[4].mxu1 }
 0x2e2   :  { %v2240_v10 = vpop.f32.mrb[5].mxu1 }
 0x2e5   :  { %v2242_v6 = vpop.f32.mrb[6].mxu1 }
 0x2e6   :  { %v2244_v11 = vpop.f32.mrb[7].mxu1 }
 0x2ea   :  { %v667_v14 = vpop.f32.mrb[4].mxu0 }
 0x2eb   :  { %v669_v16 = vpop.f32.mrb[5].mxu0 }
 0x2ec   :  { %948 = vmatprep.mubr.f32.mxu0 %v669_v16  ;;  %v1078_v16 = vld [vmem:[#allocation4 + $0x538] sm:$0xff] }
 0x2ed   :  { %949 = vmatmul.mubr.f32.vlgmr.msra.gmra.mrb[8].mxu0 %v667_v14  ;;  %v1076_v14 = vld [vmem:[#allocation4 + $0x528] sm:$0xff] }
 0x2ee   :  { %1816 = vmatpush1.bf16.msra.mxu0 %v2226_v31  ;;  %v673_v19 = vpop.f32.mrb[6].mxu0  ;;  %v1985_v31 = vld [vmem:[%s2390_s7 + $0x20] sm:$0xff] }
 0x2ef   :  { %v675_v1 = vpop.f32.mrb[7].mxu0  ;;  %1818 = vmatprep.subr.bf16.mxu0 %v1817_v18  ;;  %v1851_v18 = vpack.c.bf16 %v1073_v13, %v1071_v12  ;;  %v1206_v12 = vld [vmem:[%s2388_s5 + $0x30] sm:$0xff]  ;;  %v1209_v13 = vld [vmem:[%s2388_s5 + $0x48] sm:$0xff] }
 0x2f0   :  { %954 = vmatprep.mubr.f32.mxu0 %v675_v1  ;;  %v1075_v1 = vld [vmem:[#allocation4 + $0x520] sm:$0xff] }
 0x2f1   :  { %955 = vmatmul.mubr.f32.gmra.mrb[10].mxu0 %v673_v19  ;;  %v1853_v19 = vpack.c.bf16 %v1078_v16, %v1076_v14  ;;  %v1855_v22 = vpack.c.bf16 %v1077_v32, %v1075_v1  ;;  %v1211_v14 = vld [vmem:[%s2388_s5 + $0x58] sm:$0xff]  ;;  %v1208_v1 = vld [vmem:[%s2388_s5 + $0x40] sm:$0xff]  ;;  %v1210_v32 = vld [vmem:[%s2388_s5 + $0x50] sm:$0xff] }
 0x2f2   :  { %1025 = vmatprep.mubr.f32.mxu0 %v2066_v0 }
 0x2f5   :  { %1517 = vmatmul.mubr.msk.f32.vlgmr.msra.gmra.mrb[12].mxu0 %vm82_vm0, %v1985_v31  ;;  %v1861_v31 = vpack.c.bf16 %v1086_v27, %v1084_v26  ;;  %v1214_v26 = vld [vmem:[%s2388_s5 + $0x70] sm:$0xff]  ;;  %v1217_v27 = vld [vmem:[%s2388_s5 + $0x88] sm:$0xff] }
 0x2f6   :  { %1031 = vmatprep.mubr.f32.mxu0 %v2066_v0  ;;  %1820 = vmatpush1.bf16.msra.mxu0 %v1819_v23  ;;  %v1857_v23 = vpack.c.bf16 %v1082_v21, %v1080_v4  ;;  %v1213_v21 = vld [vmem:[%s2388_s5 + $0x68] sm:$0xff] }
 0x2f7   :  { %1822 = vmatprep.subr.bf16.mxu0 %v1821_v24  ;;  %v1079_v24 = vld [vmem:[#allocation4 + $0x540] sm:$0xff] }
 0x2f8   :  { %v1859_v28 = vpack.c.bf16 %v1081_v25, %v1079_v24  ;;  %v1212_v25 = vld [vmem:[%s2388_s5 + $0x60] sm:$0xff] }
 0x2f9   :  { %1518 = vmatmul.mubr.msk.f32.gmra.mrb[14].mxu0 %vm82_vm0, %v1986_v35  ;;  %v1087_v35 = vld [vmem:[#allocation4 + $0x580] sm:$0xff] }
 0x2fa   :  { %1824 = vmatpush1.bf16.msra.mxu0 %v1823_v29  ;;  %v1083_v29 = vld [vmem:[#allocation4 + $0x560] sm:$0xff] }
 0x2fb   :  { %1826 = vmatprep.subr.bf16.mxu0 %v1825_v2  ;;  %v1085_v2 = vld [vmem:[#allocation4 + $0x570] sm:$0xff] }
 0x2fc   :  { %v1863_v33 = vpack.c.bf16 %v1085_v2, %v1083_v29  ;;  %v1216_v2 = vld [vmem:[%s2388_s5 + $0x80] sm:$0xff] }
 0x2fe   :  { %1828 = vmatpush1.bf16.msra.mxu0 %v1827_v36  ;;  %v1089_v36 = vld [vmem:[#allocation4 + $0x590] sm:$0xff] }
 0x2ff   :  { %1830 = vmatprep.subr.bf16.mxu0 %v1829_v37  ;;  %v1092_v37 = vld [vmem:[#allocation4 + $0x5a8] sm:$0xff]  ;;  %v1867_v39 = vpack.c.bf16 %v1089_v36, %v1087_v35  ;;  %v1220_v36 = vld [vmem:[%s2388_s5 + $0xa0] sm:$0xff] }
 0x300   :  { %v1869_v40 = vpack.c.bf16 %v1094_v38, %v1092_v37  ;;  %v1222_v37 = vld [vmem:[%s2388_s5 + $0xb0] sm:$0xff]  ;;  %v1225_v38 = vld [vmem:[%s2388_s5 + $0xc8] sm:$0xff] }
 0x302   :  { %1832 = vmatpush1.bf16.msra.mxu0 %v1831_v42  ;;  %v1093_v42 = vld [vmem:[#allocation4 + $0x5b0] sm:$0xff] }
 0x303   :  { %1834 = vmatprep.subr.bf16.mxu0 %v1833_v43  ;;  %v1096_v43 = vld [vmem:[#allocation4 + $0x5c8] sm:$0xff]  ;;  %v1871_v45 = vpack.c.bf16 %v1093_v42, %v1091_v41  ;;  %v1224_v42 = vld [vmem:[%s2388_s5 + $0xc0] sm:$0xff] }
 0x304   :  { %v1873_v46 = vpack.c.bf16 %v1098_v44, %v1096_v43  ;;  %v1226_v43 = vld [vmem:[%s2388_s5 + $0xd0] sm:$0xff]  ;;  %v1229_v44 = vld [vmem:[%s2388_s5 + $0xe8] sm:$0xff] }
 0x306   :  { %1836 = vmatpush1.bf16.msra.mxu0 %v1835_v48  ;;  %v1097_v48 = vld [vmem:[#allocation4 + $0x5d0] sm:$0xff] }
 0x307   :  { %1838 = vmatprep.subr.bf16.mxu0 %v1837_v49  ;;  %v1100_v49 = vld [vmem:[#allocation4 + $0x5e8] sm:$0xff]  ;;  %v1875_v51 = vpack.c.bf16 %v1097_v48, %v1095_v47  ;;  %v1228_v48 = vld [vmem:[%s2388_s5 + $0xe0] sm:$0xff] }
 0x308   :  { %v1877_v52 = vpack.c.bf16 %v1102_v50, %v1100_v49  ;;  %v1230_v49 = vld [vmem:[%s2388_s5 + $0xf0] sm:$0xff] }
 0x309   :  { %v1911_v50 = vpack.c.bf16 %v1230_v49, %v1228_v48 }
 0x30a   :  { %1840 = vmatpush1.bf16.msra.mxu0 %v1839_v3  ;;  %v1101_v3 = vld [vmem:[#allocation4 + $0x5f0] sm:$0xff] }
 0x30b   :  { %1842 = vmatprep.subr.bf16.mxu0 %v1841_v54  ;;  %v1879_v54 = vpack.c.bf16 %v1101_v3, %v1099_v53  ;;  %v1416_v53 = vld [vmem:[#allocation6 + $0x80] sm:$0xff]  ;;  %v1417_v3 = vld [vmem:[#allocation6 + $0x88] sm:$0xff] }
 0x30c   :  { %v1917_v55 = vpack.c.bf16 %v1417_v3, %v1416_v53 }
 0x30e   :  { %1844 = vmatpush1.bf16.msra.mxu0 %v1843_v59  ;;  %v1202_v59 = vld [vmem:[%s2388_s5 + $0x10] sm:$0xff]  ;;  %1918 = vmatprep.subr.bf16.mxu1 %v1917_v55 }
 0x30f   :  { %1846 = vmatprep.subr.bf16.mxu0 %v1845_v60  ;;  %v1205_v60 = vld [vmem:[%s2388_s5 + $0x28] sm:$0xff]  ;;  %v1883_v62 = vpack.c.bf16 %v1202_v59, %v1200_v58  ;;  %v1419_v58 = vld [vmem:[#allocation6 + $0x98] sm:$0xff] }
 0x312   :  { %1848 = vmatpush1.bf16.msra.mxu0 %v1847_v7  ;;  %v1885_v7 = vpack.c.bf16 %v1207_v61, %v1205_v60  ;;  %v1402_v61 = vld [vmem:[#allocation6 + $0x10] sm:$0xff] }
 0x313   :  { %1850 = vmatprep.subr.bf16.mxu0 %v1849_v8  ;;  %v1204_v8 = vld [vmem:[%s2388_s5 + $0x20] sm:$0xff] }
 0x314   :  { %v1887_v16 = vpack.c.bf16 %v1206_v12, %v1204_v8  ;;  %v1404_v12 = vld [vmem:[#allocation6 + $0x20] sm:$0xff] }
 0x316   :  { %1852 = vmatpush1.bf16.msra.mxu0 %v1851_v18 }
 0x317   :  { %1854 = vmatprep.subr.bf16.mxu0 %v1853_v19  ;;  %v1889_v19 = vpack.c.bf16 %v1211_v14, %v1209_v13  ;;  %v1422_v13 = vld [vmem:[#allocation6 + $0xb0] sm:$0xff]  ;;  %v1423_v14 = vld [vmem:[#allocation6 + $0xb8] sm:$0xff] }
 0x31a   :  { %1856 = vmatpush1.bf16.msra.mxu0 %v1855_v22  ;;  %v1215_v22 = vld [vmem:[%s2388_s5 + $0x78] sm:$0xff] }
 0x31b   :  { %1858 = vmatprep.subr.bf16.mxu0 %v1857_v23  ;;  %v1891_v23 = vpack.c.bf16 %v1210_v32, %v1208_v1  ;;  %v1893_v24 = vpack.c.bf16 %v1215_v22, %v1213_v21  ;;  %v1407_v1 = vld [vmem:[#allocation6 + $0x38] sm:$0xff]  ;;  %v1424_v32 = vld [vmem:[#allocation6 + $0xc0] sm:$0xff] }
 0x31e   :  { %1860 = vmatpush1.bf16.msra.mxu0 %v1859_v28  ;;  %v1219_v28 = vld [vmem:[%s2388_s5 + $0x98] sm:$0xff] }
 0x31f   :  { %1862 = vmatprep.subr.bf16.mxu0 %v1861_v31  ;;  %v1895_v31 = vpack.c.bf16 %v1214_v26, %v1212_v25  ;;  %v1897_v29 = vpack.c.bf16 %v1219_v28, %v1217_v27  ;;  %v1426_v25 = vld [vmem:[#allocation6 + $0xd0] sm:$0xff]  ;;  %v1427_v26 = vld [vmem:[#allocation6 + $0xd8] sm:$0xff] }
 0x320   :  { %v1937_v28 = vpack.c.bf16 %v1427_v26, %v1426_v25 }
 0x322   :  { %1864 = vmatpush1.bf16.msra.mxu0 %v1863_v33  ;;  %v1223_v33 = vld [vmem:[%s2388_s5 + $0xb8] sm:$0xff] }
 0x323   :  { %1866 = vmatprep.subr.bf16.mxu0 %v1865_v34  ;;  %v1899_v34 = vpack.c.bf16 %v1218_v5, %v1216_v2  ;;  %v1901_v35 = vpack.c.bf16 %v1223_v33, %v1221_v30  ;;  %v1428_v2 = vld [vmem:[#allocation6 + $0xe0] sm:$0xff]  ;;  %v1429_v5 = vld [vmem:[#allocation6 + $0xe8] sm:$0xff] }
 0x324   :  { %v1941_v33 = vpack.c.bf16 %v1429_v5, %v1428_v2 }
 0x326   :  { %1868 = vmatpush1.bf16.msra.mxu0 %v1867_v39  ;;  %v1227_v39 = vld [vmem:[%s2388_s5 + $0xd8] sm:$0xff] }
 0x327   :  { %1870 = vmatprep.subr.bf16.mxu0 %v1869_v40  ;;  %v1903_v40 = vpack.c.bf16 %v1222_v37, %v1220_v36  ;;  %v1905_v41 = vpack.c.bf16 %v1227_v39, %v1225_v38  ;;  %v1430_v36 = vld [vmem:[#allocation6 + $0xf0] sm:$0xff]  ;;  %v1431_v37 = vld [vmem:[#allocation6 + $0xf8] sm:$0xff] }
 0x328   :  { %v1945_v39 = vpack.c.bf16 %v1431_v37, %v1430_v36 }
 0x32a   :  { %1872 = vmatpush1.bf16.msra.mxu0 %v1871_v45  ;;  %v1231_v45 = vld [vmem:[%s2388_s5 + $0xf8] sm:$0xff] }
 0x32b   :  { %1874 = vmatprep.subr.bf16.mxu0 %v1873_v46  ;;  %v1907_v46 = vpack.c.bf16 %v1226_v43, %v1224_v42  ;;  %v1909_v47 = vpack.c.bf16 %v1231_v45, %v1229_v44  ;;  %v1232_v43 = vld [vmem:[%s2389_s6] sm:$0x3] }
 0x32c   :  { %v1237_v45 = vrot.slane %v1232_v43, %v2217_v15 }
 0x32e   :  { %1876 = vmatpush1.bf16.msra.mxu0 %v1875_v51  ;;  %v1987_v51 = vld [vmem:[%s2383_s0] sm:$0xff] }
 0x32f   :  { %1878 = vmatprep.subr.bf16.mxu0 %v1877_v52  ;;  %v1988_v52 = vld [vmem:[%s2383_s0 + $0x8] sm:$0xff] }
 0x332   :  { %1880 = vmatpush1.bf16.msra.mxu0 %v1879_v54  ;;  %v1400_v54 = vld [vmem:[#allocation6] sm:$0xff] }
 0x333   :  { %1882 = vmatprep.subr.bf16.mxu0 %v1881_v57  ;;  %v1418_v57 = vld [vmem:[#allocation6 + $0x90] sm:$0xff]  ;;  %v1919_v59 = vpack.c.bf16 %v1401_v56, %v1400_v54 }
 0x334   :  { %v1921_v60 = vpack.c.bf16 %v1419_v58, %v1418_v57 }
 0x335   :  { %1920 = vmatpush3.bf16.msra.mxu1 %v1919_v59 }
 0x336   :  { %1922 = vmatprep.subr.bf16.mxu1 %v1921_v60 }
 0x3c8   :  { %v1027_v20 = vpop.f32.mrb[12].mxu0 }
 0x3c9   :  { %v1029_v63 = vpop.f32.mrb[13].mxu0 }
 0x3ca   :  { %1167 = vmatprep.mubr.f32.mxu0 %v1029_v63  ;;  %v1421_v63 = vld [vmem:[#allocation6 + $0xa8] sm:$0xff] }
 0x3cb   :  { %1168 = vmatmul.mubr.f32.vlgmr.msra.gmra.mrb[8].mxu0 %v1027_v20  ;;  %v1403_v20 = vld [vmem:[#allocation6 + $0x18] sm:$0xff] }
 0x3cc   :  { %1884 = vmatpush1.bf16.msra.mxu0 %v1883_v62  ;;  %v1033_v18 = vpop.f32.mrb[14].mxu0  ;;  %v1420_v62 = vld [vmem:[#allocation6 + $0xa0] sm:$0xff] }
 0x3cd   :  { %1886 = vmatprep.subr.bf16.mxu0 %v1885_v7  ;;  %v1035_v4 = vpop.f32.mrb[15].mxu0  ;;  %v1923_v7 = vpack.c.bf16 %v1403_v20, %v1402_v61  ;;  %v1925_v8 = vpack.c.bf16 %v1421_v63, %v1420_v62 }
 0x3ce   :  { %1173 = vmatprep.mubr.f32.mxu0 %v1035_v4  ;;  %v1425_v4 = vld [vmem:[#allocation6 + $0xc8] sm:$0xff] }
 0x3cf   :  { %1174 = vmatmul.mubr.f32.gmra.mrb[10].mxu0 %v1033_v18  ;;  %1924 = vmatpush3.bf16.msra.mxu1 %v1923_v7  ;;  %v1929_v18 = vpack.c.bf16 %v1423_v14, %v1422_v13  ;;  %v1933_v22 = vpack.c.bf16 %v1425_v4, %v1424_v32 }
 0x3d0   :  { %1888 = vmatpush1.bf16.msra.mxu0 %v1887_v16  ;;  %1308 = vmatprep.mubr.f32.mxu0 %v2066_v0 }
 0x3d1   :  { %1890 = vmatprep.subr.bf16.mxu0 %v1889_v19  ;;  %1926 = vmatprep.subr.bf16.mxu1 %v1925_v8  ;;  %v1406_v19 = vld [vmem:[#allocation6 + $0x30] sm:$0xff] }
 0x3d2   :  { %v1931_v21 = vpack.c.bf16 %v1407_v1, %v1406_v19 }
 0x3d4   :  { %1892 = vmatpush1.bf16.msra.mxu0 %v1891_v23  ;;  %v1408_v23 = vld [vmem:[#allocation6 + $0x40] sm:$0xff] }
 0x3d5   :  { %1894 = vmatprep.subr.bf16.mxu0 %v1893_v24  ;;  %v1409_v24 = vld [vmem:[#allocation6 + $0x48] sm:$0xff] }
 0x3d6   :  { %v1935_v27 = vpack.c.bf16 %v1409_v24, %v1408_v23 }
 0x3d8   :  { %1896 = vmatpush1.bf16.msra.mxu0 %v1895_v31  ;;  %v1410_v31 = vld [vmem:[#allocation6 + $0x50] sm:$0xff] }
 0x3d9   :  { %1898 = vmatprep.subr.bf16.mxu0 %v1897_v29  ;;  %v1411_v29 = vld [vmem:[#allocation6 + $0x58] sm:$0xff] }
 0x3da   :  { %v1939_v30 = vpack.c.bf16 %v1411_v29, %v1410_v31 }
 0x3dc   :  { %1900 = vmatpush1.bf16.msra.mxu0 %v1899_v34  ;;  %v1412_v34 = vld [vmem:[#allocation6 + $0x60] sm:$0xff] }
 0x3dd   :  { %1902 = vmatprep.subr.bf16.mxu0 %v1901_v35  ;;  %v1413_v35 = vld [vmem:[#allocation6 + $0x68] sm:$0xff] }
 0x3de   :  { %v1943_v38 = vpack.c.bf16 %v1413_v35, %v1412_v34 }
 0x3e0   :  { %1904 = vmatpush1.bf16.msra.mxu0 %v1903_v40  ;;  %v1184_v40 = vld [vmem:[%s2387_s4] sm:$0x3] }
 0x3e1   :  { %1906 = vmatprep.subr.bf16.mxu0 %v1905_v41  ;;  %v1189_v41 = vrot.slane %v1184_v40, %v2217_v15  ;;  %v1193_v42 = vrot.slane %v1184_v40, %v2222_v17 }
 0x3e3   :  { %v1949_v44 = vadd.f32 %v1189_v41, %v2238_v9  ;;  %v1955_v48 = vadd.f32 %v1189_v41, %v2242_v6  ;;  %v1414_v6 = vld [vmem:[#allocation6 + $0x70] sm:$0xff] }
 0x3e4   :  { %1908 = vmatpush1.bf16.msra.mxu0 %v1907_v46  ;;  %v1952_v46 = vadd.f32 %v1193_v42, %v2240_v10 }
 0x3e5   :  { %1910 = vmatprep.subr.bf16.mxu0 %v1909_v47  ;;  %v1241_v47 = vrot.slane %v1232_v43, %v2222_v17  ;;  %v1950_v49 = vadd.f32 %v1949_v44, %v1237_v45  ;;  %v1956_v55 = vadd.f32 %v1955_v48, %v1237_v45  ;;  %v1325_v17 = vld [vmem:[%s2391_s8] sm:$0xff] }
 0x3e8   :  { %1912 = vmatpush1.bf16.msra.mxu0 %v1911_v50  ;;  %v1958_v50 = vadd.f32 %v1193_v42, %v2244_v11  ;;  %v1415_v11 = vld [vmem:[#allocation6 + $0x78] sm:$0xff] }
 0x3e9   :  { %v1947_v60 = vpack.c.bf16 %v1415_v11, %v1414_v6 }
 0x3ea   :  { %v1959_v57 = vadd.f32 %v1958_v50, %v1241_v47 }
 0x3eb   :  { %1309 = vmatmul.mubr.f32.vlgmr.msra.gmra.mrb[8].mxu0 %v1987_v51 }
 0x3ec   :  { %1314 = vmatprep.mubr.f32.mxu0 %v2066_v0 }
 0x3ef   :  { %1315 = vmatmul.mubr.f32.gmra.mrb[10].mxu0 %v1988_v52  ;;  %v1953_v52 = vadd.f32 %v1952_v46, %v1241_v47 }
 0x3f0   :  { %1393 = vmatprep.mubr.f32.mxu0 %v2066_v0  ;;  %v1405_v0 = vld [vmem:[#allocation6 + $0x28] sm:$0xff] }
 0x3f1   :  { %v1927_v16 = vpack.c.bf16 %v1405_v0, %v1404_v12 }
 0x3f3   :  { %1928 = vmatpush3.bf16.msra.mxu1 %v1927_v16 }
 0x3f4   :  { %1930 = vmatprep.subr.bf16.mxu1 %v1929_v18 }
 0x3f7   :  { %1932 = vmatpush3.bf16.msra.mxu1 %v1931_v21 }
 0x3f8   :  { %1934 = vmatprep.subr.bf16.mxu1 %v1933_v22 }
 0x3fb   :  { %1936 = vmatpush3.bf16.msra.mxu1 %v1935_v27 }
 0x3fc   :  { %1938 = vmatprep.subr.bf16.mxu1 %v1937_v28 }
 0x3ff   :  { %1940 = vmatpush3.bf16.msra.mxu1 %v1939_v30 }
 0x400   :  { %1942 = vmatprep.subr.bf16.mxu1 %v1941_v33 }
 0x403   :  { %1944 = vmatpush3.bf16.msra.mxu1 %v1943_v38 }
 0x404   :  { %1946 = vmatprep.subr.bf16.mxu1 %v1945_v39 }
 0x407   :  { %1948 = vmatpush3.bf16.msra.mxu1 %v1947_v60 }
 0x4be   :  { %v1310_v51 = vpop.f32.mrb[8].mxu0 }
 0x4bf   :  { %v1951_v53 = vadd.f32 %v1950_v49, %v1310_v51  ;;  %v1312_v3 = vpop.f32.mrb[9].mxu0 }
 0x4c0   :  { %v1954_v54 = vadd.f32 %v1953_v52, %v1312_v3 }
 0x4c2   :  { %v1316_v56 = vpop.f32.mrb[10].mxu0 }
 0x4c3   :  { %v1957_v9 = vadd.f32 %v1956_v55, %v1316_v56  ;;  %v1318_v58 = vpop.f32.mrb[11].mxu0 }
 0x4c4   :  { %v1960_v15 = vadd.f32 %v1959_v57, %v1318_v58 }
 0x4c5   :  { %v1915_v59 = vpack.c.bf16 %v1957_v9, %v1951_v53 }
 0x4c6   :  { %v1913_v10 = vpack.c.bf16 %v1960_v15, %v1954_v54 }
 0x4c8   :  { %1914 = vmatprep.subr.bf16.mxu0 %v1913_v10 }
 0x4c9   :  { %1916 = vmatpush1.bf16.msra.mxu0 %v1915_v59 }
 0x4cc   :  { %1519 = vmatmul.mubr.msk.f32.vlgmr.msra.gmra.mrb[16].mxu0 %vm82_vm0, %v1325_v17 }
 0x59f   :  { %v1395_v61 = vpop.f32.mrb[16].mxu0 }
 0x5a0   :  { %v1397_v20 = vpop.f32.mrb[17].mxu0 }
 0x5a1   :  { %1496 = vmatprep.mubr.f32.mxu1 %v1397_v20 }
 0x5a2   :  { %1497 = vmatmul.mubr.f32.vlgmr.msra.gmra.mrb[8].mxu1 %v1395_v61 }
 0x675   :  { %v1560_v62 = vpop.f32.mrb[8].mxu1 }
 0x676   :  { %v1561_v63 = vpop.f32.mrb[9].mxu1 }
 0x677   :  { %v1562_v7 = vadd.f32 %v1561_v63, %v1560_v62 }
 0x679   :  { %1502 = vst [vmem:[%s2393_s10] sm:$0xff] %v1562_v7 }
 0x67a   :  { %1507 = vsyncpa [#allocation3], 1 }
 0x67b   :  { %1508 = vsyncpa [#allocation5], 1 }

</bundles_post_ra>
